<compile_context>
chip_gen: v7x
topology: tpu7x:2x2x1
jax: 0.10.0
libtpu: 0.0.40
codegen_flags: <defaults>
</compile_context>

<pallas_src>
import functools

import jax
import jax.numpy as jnp
from jax import lax
from jax.experimental import pallas as pl
from jax.experimental.pallas import tpu as pltpu

LRELU_SLOPE = 0.2
BN_EPS = 1e-5
_VMEM_LIMIT = 48 * 1024 * 1024      # explicit scoped-VMEM cap (fits v7x 64 MiB)
_VMEM_BUDGET = 40 * 1024 * 1024     # working-set budget used for tile sizing
_TM_TARGET = 256                    # default M-tile (rows)


def _round_up(x, m):
    return (x + m - 1) // m * m


def _choose_tm(M, Kp, Np):
    """Largest M-tile (<= _TM_TARGET, multiple of 16 for bf16 sublane packing)
    whose double-buffered bf16 A/Y tiles + resident weight + f32 temps fit."""
    tm = _TM_TARGET
    while tm > 16:
        need = 2 * (2 * tm * (Kp + Np) + 2 * Kp * Np) + 4 * tm * Np
        if need <= _VMEM_BUDGET:
            break
        tm //= 2
    return min(tm, _round_up(M, 16))


# ------------------------------ Pallas kernels -------------------------------

def _mm_act_kernel(a_ref, w_ref, o_ref, *, act):
    """One M-tile: (tm,K)@(K,N) on the MXU + fused activation (f32 epilogue)."""
    x = jnp.dot(a_ref[...], w_ref[...], preferred_element_type=jnp.float32)
    if act == "lrelu":
        x = jnp.maximum(x, LRELU_SLOPE * x)        # single vmax
    elif act == "sigmoid":
        x = pl.reciprocal(1.0 + jnp.exp(-x), approx=True)   # EUP exp + recip
    o_ref[...] = x.astype(o_ref.dtype)


def _mm_stats_kernel(a_ref, w_ref, o_ref, sum_ref, sq_ref):
    """One M-tile matmul; also emits per-tile f32 (sum, sum of squares)
    partials so batch-norm statistics can be reduced outside the kernel
    without forcing the whole M axis into a single resident block."""
    x = jnp.dot(a_ref[...], w_ref[...], preferred_element_type=jnp.float32)
    o_ref[...] = x.astype(o_ref.dtype)
    sum_ref[...] = jnp.sum(x, axis=0, keepdims=True)
    sq_ref[...] = jnp.sum(x * x, axis=0, keepdims=True)


def _affine_lrelu_kernel(x_ref, scale_ref, shift_ref, o_ref):
    """y = LeakyReLU_0.2(x*scale + shift)  (folded train-mode BatchNorm)."""
    x = x_ref[...].astype(jnp.float32) * scale_ref[...] + shift_ref[...]
    o_ref[...] = jnp.maximum(x, LRELU_SLOPE * x).astype(o_ref.dtype)


# ----------------------------- pallas_call drivers ---------------------------

def matmul_act_layer(a, w, *, act, tm, out_dtype):
    Mp, Kp = a.shape
    _, Np = w.shape
    grid_m = Mp // tm
    return pl.pallas_call(
        functools.partial(_mm_act_kernel, act=act),
        out_shape=jax.ShapeDtypeStruct((Mp, Np), out_dtype),
        grid=(grid_m,),
        in_specs=[
            pl.BlockSpec((tm, Kp), lambda i: (i, 0)),
            pl.BlockSpec((Kp, Np), lambda i: (0, 0)),    # weight stays resident
        ],
        out_specs=pl.BlockSpec((tm, Np), lambda i: (i, 0)),
        compiler_params=pltpu.CompilerParams(
            dimension_semantics=("parallel",),
            vmem_limit_bytes=_VMEM_LIMIT),
        cost_estimate=pl.CostEstimate(
            flops=2 * Mp * Kp * Np,
            transcendentals=Mp * Np if act == "sigmoid" else 0,
            bytes_accessed=2 * (Mp * Kp + Kp * Np)
            + Mp * Np * jnp.dtype(out_dtype).itemsize),
    )(a, w)


def matmul_stats_layer(a, w, *, tm):
    Mp, Kp = a.shape
    _, Np = w.shape
    grid_m = Mp // tm
    return pl.pallas_call(
        _mm_stats_kernel,
        out_shape=(
            jax.ShapeDtypeStruct((Mp, Np), jnp.bfloat16),
            jax.ShapeDtypeStruct((grid_m, 1, Np), jnp.float32),
            jax.ShapeDtypeStruct((grid_m, 1, Np), jnp.float32),
        ),
        grid=(grid_m,),
        in_specs=[
            pl.BlockSpec((tm, Kp), lambda i: (i, 0)),
            pl.BlockSpec((Kp, Np), lambda i: (0, 0)),
        ],
        out_specs=(
            pl.BlockSpec((tm, Np), lambda i: (i, 0)),
            pl.BlockSpec((None, 1, Np), lambda i: (i, 0, 0)),
            pl.BlockSpec((None, 1, Np), lambda i: (i, 0, 0)),
        ),
        compiler_params=pltpu.CompilerParams(
            dimension_semantics=("parallel",),
            vmem_limit_bytes=_VMEM_LIMIT),
        cost_estimate=pl.CostEstimate(
            flops=2 * Mp * Kp * Np + 3 * Mp * Np,
            transcendentals=0,
            bytes_accessed=2 * (Mp * Kp + Kp * Np + Mp * Np) + 8 * grid_m * Np),
    )(a, w)


def affine_lrelu_layer(x, scale, shift, *, tm):
    Mp, Np = x.shape
    grid_m = Mp // tm
    return pl.pallas_call(
        _affine_lrelu_kernel,
        out_shape=jax.ShapeDtypeStruct((Mp, Np), jnp.bfloat16),
        grid=(grid_m,),
        in_specs=[
            pl.BlockSpec((tm, Np), lambda i: (i, 0)),
            pl.BlockSpec((1, Np), lambda i: (0, 0)),
            pl.BlockSpec((1, Np), lambda i: (0, 0)),
        ],
        out_specs=pl.BlockSpec((tm, Np), lambda i: (i, 0)),
        compiler_params=pltpu.CompilerParams(
            dimension_semantics=("parallel",),
            vmem_limit_bytes=_VMEM_LIMIT),
        cost_estimate=pl.CostEstimate(
            flops=3 * Mp * Np, transcendentals=0,
            bytes_accessed=4 * Mp * Np + 8 * Np),
    )(x, scale, shift)


# ------------------------------ JAX-side glue ---------------------------------

def im2col(x, kh, kw, stride, pad):
    """x: (B, C, H, W) -> patches (B*OH*OW, C*kh*kw) with (C, kh, kw) ordering."""
    B, C, H, W = x.shape
    xp = jnp.pad(x, ((0, 0), (0, 0), (pad, pad), (pad, pad)))
    OH = (H + 2 * pad - kh) // stride + 1
    OW = (W + 2 * pad - kw) // stride + 1
    cols = []
    for i in range(kh):
        for j in range(kw):
            cols.append(xp[:, :, i:i + stride * OH:stride, j:j + stride * OW:stride])
    p = jnp.stack(cols, axis=0).reshape(kh, kw, B, C, OH, OW)
    p = p.transpose(2, 4, 5, 3, 0, 1)              # (B, OH, OW, C, kh, kw)
    return p.reshape(B * OH * OW, C * kh * kw), OH, OW


def conv_block(x, w_oihw, gamma, beta, *, stride, pad, use_bn, act,
               out_dtype=jnp.bfloat16):
    B = x.shape[0]
    Cout, _, kh, kw = w_oihw.shape
    patches, OH, OW = im2col(x, kh, kw, stride, pad)
    M, K = patches.shape

    # MXU/lane-friendly padding: K, N -> multiples of 128, M -> multiple of tm.
    Kp = _round_up(K, 128)
    Np = _round_up(Cout, 128)
    tm = _choose_tm(M, Kp, Np)
    Mp = _round_up(M, tm)

    a = jnp.pad(patches.astype(jnp.bfloat16), ((0, Mp - M), (0, Kp - K)))
    w_kn = w_oihw.reshape(Cout, K).T.astype(jnp.bfloat16)        # (K, Cout)
    w = jnp.pad(w_kn, ((0, Kp - K), (0, Np - Cout)))

    if use_bn:
        y, psum, psq = matmul_stats_layer(a, w, tm=tm)
        # Padded rows of `a` are exact zeros -> contribute 0 to the partials,
        # so dividing by the real M gives exact train-mode (biased) statistics.
        mean = jnp.sum(psum, axis=0) / M                          # (1, Np) f32
        var = jnp.maximum(jnp.sum(psq, axis=0) / M - mean * mean, 0.0)
        g = jnp.pad(gamma.astype(jnp.float32), (0, Np - Cout)).reshape(1, Np)
        b = jnp.pad(beta.astype(jnp.float32), (0, Np - Cout)).reshape(1, Np)
        scale = g * lax.rsqrt(var + BN_EPS)
        shift = b - mean * scale
        y = affine_lrelu_layer(y, scale, shift, tm=tm)
    else:
        y = matmul_act_layer(a, w, act=act, tm=tm, out_dtype=out_dtype)

    y = y[:M, :Cout]
    return y.reshape(B, OH, OW, Cout).transpose(0, 3, 1, 2)       # back to NCHW


def netD_forward(x, p):
    # Conv(nc->ndf*2, 4, 2, 1) + LeakyReLU(0.2)
    x = conv_block(x, p["w1"], None, None, stride=2, pad=1, use_bn=False, act="lrelu")
    # Conv(ndf*2->ndf*4, 4, 2, 1) + BatchNorm (train mode) + LeakyReLU(0.2)
    x = conv_block(x, p["w2"], p["g2"], p["b2"], stride=2, pad=1, use_bn=True, act="lrelu")
    # Conv(ndf*4->ndf*8, 4, 2, 1) + BatchNorm (train mode) + LeakyReLU(0.2)
    x = conv_block(x, p["w3"], p["g3"], p["b3"], stride=2, pad=1, use_bn=True, act="lrelu")
    # Conv(ndf*8->1, 4, 1, 0) + Sigmoid   (lane-dense: N padded to 128)
    x = conv_block(x, p["w4"], None, None, stride=1, pad=0, use_bn=False,
                   act="sigmoid", out_dtype=jnp.float32)
    return x.reshape(-1, 1)                                       # output.view(-1, 1)


# ------------------------------ pure-JAX reference ----------------------------

def netD_reference(x, p):
    def conv(x, w, s, pad):
        return lax.conv_general_dilated(x, w, (s, s), [(pad, pad), (pad, pad)],
                                        dimension_numbers=("NCHW", "OIHW", "NCHW"))

    def bn(x, g, b, eps=BN_EPS):
        m = jnp.mean(x, axis=(0, 2, 3), keepdims=True)
        v = jnp.mean(jnp.square(x - m), axis=(0, 2, 3), keepdims=True)
        return (x - m) * lax.rsqrt(v + eps) * g.reshape(1, -1, 1, 1) + b.reshape(1, -1, 1, 1)

    lrelu = lambda t: jnp.where(t > 0, t, LRELU_SLOPE * t)
    x = lrelu(conv(x, p["w1"], 2, 1))
    x = lrelu(bn(conv(x, p["w2"], 2, 1), p["g2"], p["b2"]))
    x = lrelu(bn(conv(x, p["w3"], 2, 1), p["g3"], p["b3"]))
    x = jax.nn.sigmoid(conv(x, p["w4"], 1, 0))
    return x.reshape(-1, 1)


# ------------------------------------ main ------------------------------------

def make_params(key, nc, ndf):
    ks = jax.random.split(key, 8)
    f32 = jnp.float32

    def w(k, shape):  # DCGAN-style init N(0, 0.02)
        return (0.02 * jax.random.normal(k, shape)).astype(f32)

    c1, c2, c3 = ndf * 2, ndf * 4, ndf * 8
    return {
        "w1": w(ks[0], (c1, nc, 4, 4)),
        "w2": w(ks[1], (c2, c1, 4, 4)),
        "g2": (1.0 + 0.02 * jax.random.normal(ks[2], (c2,))).astype(f32),
        "b2": (0.02 * jax.random.normal(ks[3], (c2,))).astype(f32),
        "w3": w(ks[4], (c3, c2, 4, 4)),
        "g3": (1.0 + 0.02 * jax.random.normal(ks[5], (c3,))).astype(f32),
        "b3": (0.02 * jax.random.normal(ks[6], (c3,))).astype(f32),
        "w4": w(ks[7], (1, c3, 4, 4)),
    }


if __name__ == "__main__":
    key = jax.random.PRNGKey(0)
    k_x, k_p = jax.random.split(key)

    B, nc, ndf, H = 2, 3, 4, 32   # 32x32 input: 32 -> 16 -> 8 -> 4 -> 1
    x = jax.random.normal(k_x, (B, nc, H, H), dtype=jnp.float32)
    params = make_params(k_p, nc, ndf)

    out = jax.block_until_ready(jax.jit(netD_forward)(x, params))
    ref = jax.block_until_ready(jax.jit(netD_reference)(x, params))

    assert out.shape == (B, 1), out.shape
    # bf16 matmul inputs / inter-layer activations vs a pure-f32 reference.
    assert jnp.allclose(out, ref, atol=2e-2, rtol=2e-2), (out, ref)
    print("KERNEL_OK")
</pallas_src>

<mosaic_0001>
module attributes {stable_mosaic.version = 11 : i64} {
  func.func @_mm_act_kernel(%arg0: i32, %arg1: memref<256x128xbf16, #tpu.memory_space<vmem>>, %arg2: memref<128x128xbf16, #tpu.memory_space<vmem>>, %arg3: memref<256x128xbf16, #tpu.memory_space<vmem>>) attributes {dimension_semantics = [#tpu.dimension_semantics<parallel>], iteration_bounds = array<i64: 2>, scalar_prefetch = 0 : i64, scratch_operands = 0 : i64, tpu.core_type = #tpu.core_type<tc>, window_params = [{transform_indices = @transform_0, window_bounds = array<i64: 256, 128>}, {pipeline_mode = #tpu.pipeline_mode<synchronous>, transform_indices = @transform_1, window_bounds = array<i64: 128, 128>}, {transform_indices = @transform_2, window_bounds = array<i64: 256, 128>}]} {
    %c0 = arith.constant 0 : index
    %c0_0 = arith.constant 0 : index
    %0 = vector.load %arg1[%c0, %c0_0] : memref<256x128xbf16, #tpu.memory_space<vmem>>, vector<256x128xbf16>
    %c0_1 = arith.constant 0 : index
    %c0_2 = arith.constant 0 : index
    %1 = vector.load %arg2[%c0_1, %c0_2] : memref<128x128xbf16, #tpu.memory_space<vmem>>, vector<128x128xbf16>
    %cst = arith.constant dense<0.000000e+00> : vector<256x128xf32>
    %2 = tpu.matmul %0, %1, %cst {dimension_numbers = #tpu.dot_dimension_numbers<[1], [0], [0], [1], [0, 0, 1, 1], [], []>} : vector<256x128xbf16>, vector<128x128xbf16>, vector<256x128xf32> -> vector<256x128xf32>
    %cst_3 = arith.constant 2.000000e-01 : f32
    %3 = vector.broadcast %cst_3 : f32 to vector<256x128xf32>
    %4 = arith.mulf %3, %2 : vector<256x128xf32>
    %5 = arith.maximumf %2, %4 : vector<256x128xf32>
    %6 = arith.truncf %5 : vector<256x128xf32> to vector<256x128xbf16>
    %c0_4 = arith.constant 0 : index
    %c0_5 = arith.constant 0 : index
    %7 = vector.load %arg3[%c0_4, %c0_5] : memref<256x128xbf16, #tpu.memory_space<vmem>>, vector<256x128xbf16>
    tpu.vector_store %arg3[%c0_4, %c0_5], %6 {strides = array<i32>} : memref<256x128xbf16, #tpu.memory_space<vmem>>, vector<256x128xbf16>,
    return
  }
  func.func @transform_0(%arg0: i32) -> (i32, i32) {
    %c0_i32 = arith.constant 0 : i32
    %c0_i32_0 = arith.constant 0 : i32
    return %arg0, %c0_i32 : i32, i32
  }
  func.func @transform_1(%arg0: i32) -> (i32, i32) {
    %c0_i32 = arith.constant 0 : i32
    %c0_i32_0 = arith.constant 0 : i32
    %c0_i32_1 = arith.constant 0 : i32
    return %c0_i32, %c0_i32_0 : i32, i32
  }
  func.func @transform_2(%arg0: i32) -> (i32, i32) {
    %c0_i32 = arith.constant 0 : i32
    %c0_i32_0 = arith.constant 0 : i32
    return %arg0, %c0_i32 : i32, i32
  }
}

module attributes {stable_mosaic.version = 11 : i64} {
  func.func @_mm_stats_kernel(%arg0: i32, %arg1: memref<128x128xbf16, #tpu.memory_space<vmem>>, %arg2: memref<128x128xbf16, #tpu.memory_space<vmem>>, %arg3: memref<128x128xbf16, #tpu.memory_space<vmem>>, %arg4: memref<1x1x128xf32, #tpu.memory_space<vmem>>, %arg5: memref<1x1x128xf32, #tpu.memory_space<vmem>>) attributes {dimension_semantics = [#tpu.dimension_semantics<parallel>], iteration_bounds = array<i64: 1>, scalar_prefetch = 0 : i64, scratch_operands = 0 : i64, tpu.core_type = #tpu.core_type<tc>, window_params = [{transform_indices = @transform_0, window_bounds = array<i64: 128, 128>}, {pipeline_mode = #tpu.pipeline_mode<synchronous>, transform_indices = @transform_1, window_bounds = array<i64: 128, 128>}, {transform_indices = @transform_2, window_bounds = array<i64: 128, 128>}, {transform_indices = @transform_3, window_bounds = array<i64: 1, 1, 128>}, {transform_indices = @transform_4, window_bounds = array<i64: 1, 1, 128>}]} {
    %c0 = arith.constant 0 : index
    %c0_0 = arith.constant 0 : index
    %0 = vector.load %arg1[%c0, %c0_0] : memref<128x128xbf16, #tpu.memory_space<vmem>>, vector<128x128xbf16>
    %c0_1 = arith.constant 0 : index
    %c0_2 = arith.constant 0 : index
    %1 = vector.load %arg2[%c0_1, %c0_2] : memref<128x128xbf16, #tpu.memory_space<vmem>>, vector<128x128xbf16>
    %cst = arith.constant dense<0.000000e+00> : vector<128x128xf32>
    %2 = tpu.matmul %0, %1, %cst {dimension_numbers = #tpu.dot_dimension_numbers<[1], [0], [0], [1], [0, 0, 1, 1], [], []>} : vector<128x128xbf16>, vector<128x128xbf16>, vector<128x128xf32> -> vector<128x128xf32>
    %3 = arith.truncf %2 : vector<128x128xf32> to vector<128x128xbf16>
    %c0_3 = arith.constant 0 : index
    %c0_4 = arith.constant 0 : index
    %4 = vector.load %arg3[%c0_3, %c0_4] : memref<128x128xbf16, #tpu.memory_space<vmem>>, vector<128x128xbf16>
    tpu.vector_store %arg3[%c0_3, %c0_4], %3 {strides = array<i32>} : memref<128x128xbf16, #tpu.memory_space<vmem>>, vector<128x128xbf16>,
    %cst_5 = arith.constant dense<0.000000e+00> : vector<128xf32>
    %5 = vector.multi_reduction <add>, %2, %cst_5 [0] : vector<128x128xf32> to vector<128xf32>
    %6 = vector.shape_cast %5 : vector<128xf32> to vector<1x128xf32>
    %c0_6 = arith.constant 0 : index
    %c0_7 = arith.constant 0 : index
    %c0_8 = arith.constant 0 : index
    %7 = vector.load %arg4[%c0_6, %c0_7, %c0_8] : memref<1x1x128xf32, #tpu.memory_space<vmem>>, vector<1x1x128xf32>
    %8 = vector.shape_cast %7 : vector<1x1x128xf32> to vector<1x128xf32>
    %9 = vector.shape_cast %6 : vector<1x128xf32> to vector<1x1x128xf32>
    tpu.vector_store %arg4[%c0_6, %c0_7, %c0_8], %9 {strides = array<i32>} : memref<1x1x128xf32, #tpu.memory_space<vmem>>, vector<1x1x128xf32>,
    %10 = arith.mulf %2, %2 : vector<128x128xf32>
    %cst_9 = arith.constant dense<0.000000e+00> : vector<128xf32>
    %11 = vector.multi_reduction <add>, %10, %cst_9 [0] : vector<128x128xf32> to vector<128xf32>
    %12 = vector.shape_cast %11 : vector<128xf32> to vector<1x128xf32>
    %c0_10 = arith.constant 0 : index
    %c0_11 = arith.constant 0 : index
    %c0_12 = arith.constant 0 : index
    %13 = vector.load %arg5[%c0_10, %c0_11, %c0_12] : memref<1x1x128xf32, #tpu.memory_space<vmem>>, vector<1x1x128xf32>
    %14 = vector.shape_cast %13 : vector<1x1x128xf32> to vector<1x128xf32>
    %15 = vector.shape_cast %12 : vector<1x128xf32> to vector<1x1x128xf32>
    tpu.vector_store %arg5[%c0_10, %c0_11, %c0_12], %15 {strides = array<i32>} : memref<1x1x128xf32, #tpu.memory_space<vmem>>, vector<1x1x128xf32>,
    return
  }
  func.func @transform_0(%arg0: i32) -> (i32, i32) {
    %c0_i32 = arith.constant 0 : i32
    %c0_i32_0 = arith.constant 0 : i32
    return %arg0, %c0_i32 : i32, i32
  }
  func.func @transform_1(%arg0: i32) -> (i32, i32) {
    %c0_i32 = arith.constant 0 : i32
    %c0_i32_0 = arith.constant 0 : i32
    %c0_i32_1 = arith.constant 0 : i32
    return %c0_i32, %c0_i32_0 : i32, i32
  }
  func.func @transform_2(%arg0: i32) -> (i32, i32) {
    %c0_i32 = arith.constant 0 : i32
    %c0_i32_0 = arith.constant 0 : i32
    return %arg0, %c0_i32 : i32, i32
  }
  func.func @transform_3(%arg0: i32) -> (i32, i32, i32) {
    %c0_i32 = arith.constant 0 : i32
    %c0_i32_0 = arith.constant 0 : i32
    %c0_i32_1 = arith.constant 0 : i32
    return %arg0, %c0_i32, %c0_i32_0 : i32, i32, i32
  }
  func.func @transform_4(%arg0: i32) -> (i32, i32, i32) {
    %c0_i32 = arith.constant 0 : i32
    %c0_i32_0 = arith.constant 0 : i32
    %c0_i32_1 = arith.constant 0 : i32
    return %arg0, %c0_i32, %c0_i32_0 : i32, i32, i32
  }
}

module attributes {stable_mosaic.version = 11 : i64} {
  func.func @_affine_lrelu_kernel(%arg0: i32, %arg1: memref<128x128xbf16, #tpu.memory_space<vmem>>, %arg2: memref<1x128xf32, #tpu.memory_space<vmem>>, %arg3: memref<1x128xf32, #tpu.memory_space<vmem>>, %arg4: memref<128x128xbf16, #tpu.memory_space<vmem>>) attributes {dimension_semantics = [#tpu.dimension_semantics<parallel>], iteration_bounds = array<i64: 1>, scalar_prefetch = 0 : i64, scratch_operands = 0 : i64, tpu.core_type = #tpu.core_type<tc>, window_params = [{transform_indices = @transform_0, window_bounds = array<i64: 128, 128>}, {pipeline_mode = #tpu.pipeline_mode<synchronous>, transform_indices = @transform_1, window_bounds = array<i64: 1, 128>}, {pipeline_mode = #tpu.pipeline_mode<synchronous>, transform_indices = @transform_2, window_bounds = array<i64: 1, 128>}, {transform_indices = @transform_3, window_bounds = array<i64: 128, 128>}]} {
    %c0 = arith.constant 0 : index
    %c0_0 = arith.constant 0 : index
    %0 = vector.load %arg1[%c0, %c0_0] : memref<128x128xbf16, #tpu.memory_space<vmem>>, vector<128x128xbf16>
    %1 = arith.extf %0 : vector<128x128xbf16> to vector<128x128xf32>
    %c0_1 = arith.constant 0 : index
    %c0_2 = arith.constant 0 : index
    %2 = vector.load %arg2[%c0_1, %c0_2] : memref<1x128xf32, #tpu.memory_space<vmem>>, vector<1x128xf32>
    %3 = vector.broadcast %2 : vector<1x128xf32> to vector<128x128xf32>
    %4 = arith.mulf %1, %3 : vector<128x128xf32>
    %c0_3 = arith.constant 0 : index
    %c0_4 = arith.constant 0 : index
    %5 = vector.load %arg3[%c0_3, %c0_4] : memref<1x128xf32, #tpu.memory_space<vmem>>, vector<1x128xf32>
    %6 = vector.broadcast %5 : vector<1x128xf32> to vector<128x128xf32>
    %7 = arith.addf %4, %6 : vector<128x128xf32>
    %cst = arith.constant 2.000000e-01 : f32
    %8 = vector.broadcast %cst : f32 to vector<128x128xf32>
    %9 = arith.mulf %8, %7 : vector<128x128xf32>
    %10 = arith.maximumf %7, %9 : vector<128x128xf32>
    %11 = arith.truncf %10 : vector<128x128xf32> to vector<128x128xbf16>
    %c0_5 = arith.constant 0 : index
    %c0_6 = arith.constant 0 : index
    %12 = vector.load %arg4[%c0_5, %c0_6] : memref<128x128xbf16, #tpu.memory_space<vmem>>, vector<128x128xbf16>
    tpu.vector_store %arg4[%c0_5, %c0_6], %11 {strides = array<i32>} : memref<128x128xbf16, #tpu.memory_space<vmem>>, vector<128x128xbf16>,
    return
  }
  func.func @transform_0(%arg0: i32) -> (i32, i32) {
    %c0_i32 = arith.constant 0 : i32
    %c0_i32_0 = arith.constant 0 : i32
    return %arg0, %c0_i32 : i32, i32
  }
  func.func @transform_1(%arg0: i32) -> (i32, i32) {
    %c0_i32 = arith.constant 0 : i32
    %c0_i32_0 = arith.constant 0 : i32
    %c0_i32_1 = arith.constant 0 : i32
    return %c0_i32, %c0_i32_0 : i32, i32
  }
  func.func @transform_2(%arg0: i32) -> (i32, i32) {
    %c0_i32 = arith.constant 0 : i32
    %c0_i32_0 = arith.constant 0 : i32
    %c0_i32_1 = arith.constant 0 : i32
    return %c0_i32, %c0_i32_0 : i32, i32
  }
  func.func @transform_3(%arg0: i32) -> (i32, i32) {
    %c0_i32 = arith.constant 0 : i32
    %c0_i32_0 = arith.constant 0 : i32
    return %arg0, %c0_i32 : i32, i32
  }
}

module attributes {stable_mosaic.version = 11 : i64} {
  func.func @_mm_stats_kernel(%arg0: i32, %arg1: memref<32x256xbf16, #tpu.memory_space<vmem>>, %arg2: memref<256x128xbf16, #tpu.memory_space<vmem>>, %arg3: memref<32x128xbf16, #tpu.memory_space<vmem>>, %arg4: memref<1x1x128xf32, #tpu.memory_space<vmem>>, %arg5: memref<1x1x128xf32, #tpu.memory_space<vmem>>) attributes {dimension_semantics = [#tpu.dimension_semantics<parallel>], iteration_bounds = array<i64: 1>, scalar_prefetch = 0 : i64, scratch_operands = 0 : i64, tpu.core_type = #tpu.core_type<tc>, window_params = [{transform_indices = @transform_0, window_bounds = array<i64: 32, 256>}, {pipeline_mode = #tpu.pipeline_mode<synchronous>, transform_indices = @transform_1, window_bounds = array<i64: 256, 128>}, {transform_indices = @transform_2, window_bounds = array<i64: 32, 128>}, {transform_indices = @transform_3, window_bounds = array<i64: 1, 1, 128>}, {transform_indices = @transform_4, window_bounds = array<i64: 1, 1, 128>}]} {
    %c0 = arith.constant 0 : index
    %c0_0 = arith.constant 0 : index
    %0 = vector.load %arg1[%c0, %c0_0] : memref<32x256xbf16, #tpu.memory_space<vmem>>, vector<32x256xbf16>
    %c0_1 = arith.constant 0 : index
    %c0_2 = arith.constant 0 : index
    %1 = vector.load %arg2[%c0_1, %c0_2] : memref<256x128xbf16, #tpu.memory_space<vmem>>, vector<256x128xbf16>
    %cst = arith.constant dense<0.000000e+00> : vector<32x128xf32>
    %2 = tpu.matmul %0, %1, %cst {dimension_numbers = #tpu.dot_dimension_numbers<[1], [0], [0], [1], [0, 0, 1, 1], [], []>} : vector<32x256xbf16>, vector<256x128xbf16>, vector<32x128xf32> -> vector<32x128xf32>
    %3 = arith.truncf %2 : vector<32x128xf32> to vector<32x128xbf16>
    %c0_3 = arith.constant 0 : index
    %c0_4 = arith.constant 0 : index
    %4 = vector.load %arg3[%c0_3, %c0_4] : memref<32x128xbf16, #tpu.memory_space<vmem>>, vector<32x128xbf16>
    tpu.vector_store %arg3[%c0_3, %c0_4], %3 {strides = array<i32>} : memref<32x128xbf16, #tpu.memory_space<vmem>>, vector<32x128xbf16>,
    %cst_5 = arith.constant dense<0.000000e+00> : vector<128xf32>
    %5 = vector.multi_reduction <add>, %2, %cst_5 [0] : vector<32x128xf32> to vector<128xf32>
    %6 = vector.shape_cast %5 : vector<128xf32> to vector<1x128xf32>
    %c0_6 = arith.constant 0 : index
    %c0_7 = arith.constant 0 : index
    %c0_8 = arith.constant 0 : index
    %7 = vector.load %arg4[%c0_6, %c0_7, %c0_8] : memref<1x1x128xf32, #tpu.memory_space<vmem>>, vector<1x1x128xf32>
    %8 = vector.shape_cast %7 : vector<1x1x128xf32> to vector<1x128xf32>
    %9 = vector.shape_cast %6 : vector<1x128xf32> to vector<1x1x128xf32>
    tpu.vector_store %arg4[%c0_6, %c0_7, %c0_8], %9 {strides = array<i32>} : memref<1x1x128xf32, #tpu.memory_space<vmem>>, vector<1x1x128xf32>,
    %10 = arith.mulf %2, %2 : vector<32x128xf32>
    %cst_9 = arith.constant dense<0.000000e+00> : vector<128xf32>
    %11 = vector.multi_reduction <add>, %10, %cst_9 [0] : vector<32x128xf32> to vector<128xf32>
    %12 = vector.shape_cast %11 : vector<128xf32> to vector<1x128xf32>
    %c0_10 = arith.constant 0 : index
    %c0_11 = arith.constant 0 : index
    %c0_12 = arith.constant 0 : index
    %13 = vector.load %arg5[%c0_10, %c0_11, %c0_12] : memref<1x1x128xf32, #tpu.memory_space<vmem>>, vector<1x1x128xf32>
    %14 = vector.shape_cast %13 : vector<1x1x128xf32> to vector<1x128xf32>
    %15 = vector.shape_cast %12 : vector<1x128xf32> to vector<1x1x128xf32>
    tpu.vector_store %arg5[%c0_10, %c0_11, %c0_12], %15 {strides = array<i32>} : memref<1x1x128xf32, #tpu.memory_space<vmem>>, vector<1x1x128xf32>,
    return
  }
  func.func @transform_0(%arg0: i32) -> (i32, i32) {
    %c0_i32 = arith.constant 0 : i32
    %c0_i32_0 = arith.constant 0 : i32
    return %arg0, %c0_i32 : i32, i32
  }
  func.func @transform_1(%arg0: i32) -> (i32, i32) {
    %c0_i32 = arith.constant 0 : i32
    %c0_i32_0 = arith.constant 0 : i32
    %c0_i32_1 = arith.constant 0 : i32
    return %c0_i32, %c0_i32_0 : i32, i32
  }
  func.func @transform_2(%arg0: i32) -> (i32, i32) {
    %c0_i32 = arith.constant 0 : i32
    %c0_i32_0 = arith.constant 0 : i32
    return %arg0, %c0_i32 : i32, i32
  }
  func.func @transform_3(%arg0: i32) -> (i32, i32, i32) {
    %c0_i32 = arith.constant 0 : i32
    %c0_i32_0 = arith.constant 0 : i32
    %c0_i32_1 = arith.constant 0 : i32
    return %arg0, %c0_i32, %c0_i32_0 : i32, i32, i32
  }
  func.func @transform_4(%arg0: i32) -> (i32, i32, i32) {
    %c0_i32 = arith.constant 0 : i32
    %c0_i32_0 = arith.constant 0 : i32
    %c0_i32_1 = arith.constant 0 : i32
    return %arg0, %c0_i32, %c0_i32_0 : i32, i32, i32
  }
}

module attributes {stable_mosaic.version = 11 : i64} {
  func.func @_affine_lrelu_kernel(%arg0: i32, %arg1: memref<32x128xbf16, #tpu.memory_space<vmem>>, %arg2: memref<1x128xf32, #tpu.memory_space<vmem>>, %arg3: memref<1x128xf32, #tpu.memory_space<vmem>>, %arg4: memref<32x128xbf16, #tpu.memory_space<vmem>>) attributes {dimension_semantics = [#tpu.dimension_semantics<parallel>], iteration_bounds = array<i64: 1>, scalar_prefetch = 0 : i64, scratch_operands = 0 : i64, tpu.core_type = #tpu.core_type<tc>, window_params = [{transform_indices = @transform_0, window_bounds = array<i64: 32, 128>}, {pipeline_mode = #tpu.pipeline_mode<synchronous>, transform_indices = @transform_1, window_bounds = array<i64: 1, 128>}, {pipeline_mode = #tpu.pipeline_mode<synchronous>, transform_indices = @transform_2, window_bounds = array<i64: 1, 128>}, {transform_indices = @transform_3, window_bounds = array<i64: 32, 128>}]} {
    %c0 = arith.constant 0 : index
    %c0_0 = arith.constant 0 : index
    %0 = vector.load %arg1[%c0, %c0_0] : memref<32x128xbf16, #tpu.memory_space<vmem>>, vector<32x128xbf16>
    %1 = arith.extf %0 : vector<32x128xbf16> to vector<32x128xf32>
    %c0_1 = arith.constant 0 : index
    %c0_2 = arith.constant 0 : index
    %2 = vector.load %arg2[%c0_1, %c0_2] : memref<1x128xf32, #tpu.memory_space<vmem>>, vector<1x128xf32>
    %3 = vector.broadcast %2 : vector<1x128xf32> to vector<32x128xf32>
    %4 = arith.mulf %1, %3 : vector<32x128xf32>
    %c0_3 = arith.constant 0 : index
    %c0_4 = arith.constant 0 : index
    %5 = vector.load %arg3[%c0_3, %c0_4] : memref<1x128xf32, #tpu.memory_space<vmem>>, vector<1x128xf32>
    %6 = vector.broadcast %5 : vector<1x128xf32> to vector<32x128xf32>
    %7 = arith.addf %4, %6 : vector<32x128xf32>
    %cst = arith.constant 2.000000e-01 : f32
    %8 = vector.broadcast %cst : f32 to vector<32x128xf32>
    %9 = arith.mulf %8, %7 : vector<32x128xf32>
    %10 = arith.maximumf %7, %9 : vector<32x128xf32>
    %11 = arith.truncf %10 : vector<32x128xf32> to vector<32x128xbf16>
    %c0_5 = arith.constant 0 : index
    %c0_6 = arith.constant 0 : index
    %12 = vector.load %arg4[%c0_5, %c0_6] : memref<32x128xbf16, #tpu.memory_space<vmem>>, vector<32x128xbf16>
    tpu.vector_store %arg4[%c0_5, %c0_6], %11 {strides = array<i32>} : memref<32x128xbf16, #tpu.memory_space<vmem>>, vector<32x128xbf16>,
    return
  }
  func.func @transform_0(%arg0: i32) -> (i32, i32) {
    %c0_i32 = arith.constant 0 : i32
    %c0_i32_0 = arith.constant 0 : i32
    return %arg0, %c0_i32 : i32, i32
  }
  func.func @transform_1(%arg0: i32) -> (i32, i32) {
    %c0_i32 = arith.constant 0 : i32
    %c0_i32_0 = arith.constant 0 : i32
    %c0_i32_1 = arith.constant 0 : i32
    return %c0_i32, %c0_i32_0 : i32, i32
  }
  func.func @transform_2(%arg0: i32) -> (i32, i32) {
    %c0_i32 = arith.constant 0 : i32
    %c0_i32_0 = arith.constant 0 : i32
    %c0_i32_1 = arith.constant 0 : i32
    return %c0_i32, %c0_i32_0 : i32, i32
  }
  func.func @transform_3(%arg0: i32) -> (i32, i32) {
    %c0_i32 = arith.constant 0 : i32
    %c0_i32_0 = arith.constant 0 : i32
    return %arg0, %c0_i32 : i32, i32
  }
}

module attributes {stable_mosaic.version = 11 : i64} {
  func.func @_mm_act_kernel(%arg0: i32, %arg1: memref<16x512xbf16, #tpu.memory_space<vmem>>, %arg2: memref<512x128xbf16, #tpu.memory_space<vmem>>, %arg3: memref<16x128xf32, #tpu.memory_space<vmem>>) attributes {dimension_semantics = [#tpu.dimension_semantics<parallel>], iteration_bounds = array<i64: 1>, scalar_prefetch = 0 : i64, scratch_operands = 0 : i64, tpu.core_type = #tpu.core_type<tc>, window_params = [{transform_indices = @transform_0, window_bounds = array<i64: 16, 512>}, {pipeline_mode = #tpu.pipeline_mode<synchronous>, transform_indices = @transform_1, window_bounds = array<i64: 512, 128>}, {transform_indices = @transform_2, window_bounds = array<i64: 16, 128>}]} {
    %c0 = arith.constant 0 : index
    %c0_0 = arith.constant 0 : index
    %0 = vector.load %arg1[%c0, %c0_0] : memref<16x512xbf16, #tpu.memory_space<vmem>>, vector<16x512xbf16>
    %c0_1 = arith.constant 0 : index
    %c0_2 = arith.constant 0 : index
    %1 = vector.load %arg2[%c0_1, %c0_2] : memref<512x128xbf16, #tpu.memory_space<vmem>>, vector<512x128xbf16>
    %cst = arith.constant dense<0.000000e+00> : vector<16x128xf32>
    %2 = tpu.matmul %0, %1, %cst {dimension_numbers = #tpu.dot_dimension_numbers<[1], [0], [0], [1], [0, 0, 1, 1], [], []>} : vector<16x512xbf16>, vector<512x128xbf16>, vector<16x128xf32> -> vector<16x128xf32>
    %cst_3 = arith.constant 0.000000e+00 : f32
    %3 = vector.broadcast %cst_3 : f32 to vector<16x128xf32>
    %4 = arith.subf %3, %2 : vector<16x128xf32>
    %5 = math.exp %4 : vector<16x128xf32>
    %cst_4 = arith.constant 1.000000e+00 : f32
    %6 = vector.broadcast %cst_4 : f32 to vector<16x128xf32>
    %7 = arith.addf %6, %5 : vector<16x128xf32>
    %8 = tpu.reciprocal %7 {approx = true} : vector<16x128xf32> -> vector<16x128xf32>
    %c0_5 = arith.constant 0 : index
    %c0_6 = arith.constant 0 : index
    %9 = vector.load %arg3[%c0_5, %c0_6] : memref<16x128xf32, #tpu.memory_space<vmem>>, vector<16x128xf32>
    tpu.vector_store %arg3[%c0_5, %c0_6], %8 {strides = array<i32>} : memref<16x128xf32, #tpu.memory_space<vmem>>, vector<16x128xf32>,
    return
  }
  func.func @transform_0(%arg0: i32) -> (i32, i32) {
    %c0_i32 = arith.constant 0 : i32
    %c0_i32_0 = arith.constant 0 : i32
    return %arg0, %c0_i32 : i32, i32
  }
  func.func @transform_1(%arg0: i32) -> (i32, i32) {
    %c0_i32 = arith.constant 0 : i32
    %c0_i32_0 = arith.constant 0 : i32
    %c0_i32_1 = arith.constant 0 : i32
    return %c0_i32, %c0_i32_0 : i32, i32
  }
  func.func @transform_2(%arg0: i32) -> (i32, i32) {
    %c0_i32 = arith.constant 0 : i32
    %c0_i32_0 = arith.constant 0 : i32
    return %arg0, %c0_i32 : i32, i32
  }
}

</mosaic_0001>

<bundles_post_ra>
// kernel: netD_forward.6
= control target key start
LH: loop header
LB: loop body
LE: loop exit
PB: predicated region body
PF: predicated region fallthrough
CT: control target
= control target key end

     0   :  { %s1118_s9 = smov 0   ;;  %s1202_s0 = inlined_call_operand.vmem [shape: bf16[512,128], index: 0, kind: input, shape index: {}]   ;;  %s1203_s1 = inlined_call_operand.vmem [shape: bf16[128,128], index: 1, kind: input, shape index: {}]   ;;  %s1204_s2 = inlined_call_operand.vmem [shape: bf16[512,128], index: 2, kind: output, shape index: {}]  }
   0x1 LB: > { %s781_s10 = sadd.s32 4294967295, %s1101_s9   ;;  %p785_p0 = scmp.ge.s32.totalorder %s1101_s9, 1  ;;  %s1101_s9 = sphi %s1118_s9, %s12_s9  }
   0x2   : > { %p113_p1 = scmp.lt.s32.totalorder %s1101_s9, 3 }
   0x4   : > { %p114_p2 = pnand %p785_p0, %p113_p1 }
   0x5   : > { %v1071_v0 = vld [vmem:[%s1203_s1] sm:$0xff] (!%p114_p2)   ;;  %s786_s13 = sshll.u32 (!%p114_p2), %s781_s10, 5  ;;  %v1072_v1 = vld [vmem:[%s1203_s1 + $0x8] sm:$0xff] (!%p114_p2)   ;;  %v1073_v2 = vld [vmem:[%s1203_s1 + $0x10] sm:$0xff] (!%p114_p2)  }
   0x6   : > { %117 = sbr.rel (%p114_p2) target bundleno = 285 (0x11d), region = 28  ;;  %p136_p3 = scmp.lt.s32.totalorder (!%p114_p2), %s786_s13, 63  ;;  %999 = vmatprep.subr.bf16.mxu0 (!%p114_p2), %v1071_v0  ;;  %1047 = vmatprep.subr.bf16.mxu1 (!%p114_p2), %v1071_v0  ;;  %v1074_v3 = vld [vmem:[%s1203_s1 + $0x18] sm:$0xff] (!%p114_p2)   ;;  %v1075_v6 = vld [vmem:[%s1203_s1 + $0x20] sm:$0xff] (!%p114_p2)   ;;  %v1076_v7 = vld [vmem:[%s1203_s1 + $0x28] sm:$0xff] (!%p114_p2)  }
   0x7   : > { %1000 = vmatpush3.bf16.msra.mxu0 (!%p114_p2), %v1071_v0  ;;  %1055 = vmatpush3.bf16.msra.mxu1 (!%p114_p2), %v1071_v0  ;;  %v1077_v8 = vld [vmem:[%s1203_s1 + $0x30] sm:$0xff] (!%p114_p2)   ;;  %v1078_v9 = vld [vmem:[%s1203_s1 + $0x38] sm:$0xff] (!%p114_p2)  }
   0x8   : > { %1001 = vmatprep.subr.bf16.mxu0 (!%p114_p2), %v1072_v1  ;;  %1048 = vmatprep.subr.bf16.mxu1 (!%p114_p2), %v1072_v1 }
   0xb   : > { %1002 = vmatpush3.bf16.msra.mxu0 (!%p114_p2), %v1072_v1  ;;  %1056 = vmatpush3.bf16.msra.mxu1 (!%p114_p2), %v1072_v1 }
   0xc   : > { %1003 = vmatprep.subr.bf16.mxu0 (!%p114_p2), %v1073_v2  ;;  %1049 = vmatprep.subr.bf16.mxu1 (!%p114_p2), %v1073_v2 }
   0xd   : > { %s1206_s13 = smov (!%p136_p3, %s786_s13), 63 }
   0xe   : > { %s787_s18 = sshll.u32 %s1206_s13, 2 }
   0xf   : > { %s1143_s21 = scalar_lea.vmem %s1202_s0, %s787_s18  ;;  %1004 = vmatpush3.bf16.msra.mxu0 %v1073_v2  ;;  %1057 = vmatpush3.bf16.msra.mxu1 %v1073_v2  ;;  %s1181_s6 = scalar_lea.vmem %s1204_s2, %s787_s18 }
  0x10   : > { %v1079_v4 = vld [vmem:[%s1143_s21] sm:$0xff]   ;;  %1005 = vmatprep.subr.bf16.mxu0 %v1074_v3  ;;  %1050 = vmatprep.subr.bf16.mxu1 %v1074_v3  ;;  %v1081_v10 = vld [vmem:[%s1143_s21 + $0x8] sm:$0xff]   ;;  %v1083_v12 = vld [vmem:[%s1143_s21 + $0x10] sm:$0xff]  }
  0x11   : > { %v1080_v5 = vld [vmem:[%s1143_s21 + $0x40] sm:$0xff]   ;;  %1015 = vmatprep.mubr.bf16.mxu0 %v1079_v4  ;;  %v1082_v11 = vld [vmem:[%s1143_s21 + $0x48] sm:$0xff]   ;;  %v1084_v13 = vld [vmem:[%s1143_s21 + $0x50] sm:$0xff]  }
  0x12   : > { %1031 = vmatprep.mubr.bf16.mxu1 %v1080_v5  ;;  %v1085_v14 = vld [vmem:[%s1143_s21 + $0x18] sm:$0xff]   ;;  %v1087_v16 = vld [vmem:[%s1143_s21 + $0x20] sm:$0xff]   ;;  %v1089_v18 = vld [vmem:[%s1143_s21 + $0x28] sm:$0xff]  }
  0x13   : > { %1006 = vmatpush3.bf16.msra.mxu0 %v1074_v3  ;;  %1058 = vmatpush3.bf16.msra.mxu1 %v1074_v3  ;;  %v1086_v15 = vld [vmem:[%s1143_s21 + $0x58] sm:$0xff]   ;;  %v1088_v17 = vld [vmem:[%s1143_s21 + $0x60] sm:$0xff]   ;;  %v1090_v19 = vld [vmem:[%s1143_s21 + $0x68] sm:$0xff]  }
  0x14   : > { %1007 = vmatprep.subr.bf16.mxu0 %v1075_v6  ;;  %1051 = vmatprep.subr.bf16.mxu1 %v1075_v6  ;;  %v1091_v20 = vld [vmem:[%s1143_s21 + $0x30] sm:$0xff]   ;;  %v1093_v22 = vld [vmem:[%s1143_s21 + $0x38] sm:$0xff]  }
  0x15   : > { %v1092_v21 = vld [vmem:[%s1143_s21 + $0x70] sm:$0xff]   ;;  %v1094_v23 = vld [vmem:[%s1143_s21 + $0x78] sm:$0xff]  }
  0x17   : > { %1008 = vmatpush3.bf16.msra.mxu0 %v1075_v6  ;;  %1059 = vmatpush3.bf16.msra.mxu1 %v1075_v6 }
  0x18   : > { %1009 = vmatprep.subr.bf16.mxu0 %v1076_v7  ;;  %1052 = vmatprep.subr.bf16.mxu1 %v1076_v7 }
  0x1b   : > { %1010 = vmatpush3.bf16.msra.mxu0 %v1076_v7  ;;  %1060 = vmatpush3.bf16.msra.mxu1 %v1076_v7 }
  0x1c   : > { %1011 = vmatprep.subr.bf16.mxu0 %v1077_v8  ;;  %1053 = vmatprep.subr.bf16.mxu1 %v1077_v8 }
  0x1f   : > { %1012 = vmatpush3.bf16.msra.mxu0 %v1077_v8  ;;  %1061 = vmatpush3.bf16.msra.mxu1 %v1077_v8 }
  0x20   : > { %1013 = vmatprep.subr.bf16.mxu0 %v1078_v9  ;;  %1054 = vmatprep.subr.bf16.mxu1 %v1078_v9 }
  0x23   : > { %1014 = vmatpush3.bf16.msra.mxu0 %v1078_v9  ;;  %1062 = vmatpush3.bf16.msra.mxu1 %v1078_v9 }
  0x26   : > { %1016 = vmatmul.mubr.bf16.vlgmr.msra.gmra.mrb[0].mxu0 %v1081_v10  ;;  %1032 = vmatmul.mubr.bf16.vlgmr.msra.gmra.mrb[0].mxu1 %v1082_v11 }
  0x27   : > { %1019 = vmatprep.mubr.bf16.mxu0 %v1083_v12  ;;  %1035 = vmatprep.mubr.bf16.mxu1 %v1084_v13 }
  0x2e   : > { %1020 = vmatmul.mubr.bf16.gmra.mrb[4].mxu0 %v1085_v14  ;;  %1036 = vmatmul.mubr.bf16.gmra.mrb[4].mxu1 %v1086_v15 }
  0x2f   : > { %1023 = vmatprep.mubr.bf16.mxu0 %v1087_v16  ;;  %1039 = vmatprep.mubr.bf16.mxu1 %v1088_v17 }
  0x36   : > { %1024 = vmatmul.mubr.bf16.gmra.mrb[8].mxu0 %v1089_v18  ;;  %1040 = vmatmul.mubr.bf16.gmra.mrb[8].mxu1 %v1090_v19 }
  0x37   : > { %1027 = vmatprep.mubr.bf16.mxu0 %v1091_v20  ;;  %1043 = vmatprep.mubr.bf16.mxu1 %v1092_v21 }
  0x3e   : > { %1028 = vmatmul.mubr.bf16.gmra.mrb[12].mxu0 %v1093_v22  ;;  %1044 = vmatmul.mubr.bf16.gmra.mrb[12].mxu1 %v1094_v23 }
  0xf9   : > { %v1017_v24 = vpop.f32.mrb[0].mxu0  ;;  %v1033_v25 = vpop.f32.mrb[0].mxu1 }
  0xfa   : > { %v503_v26 = vmul.f32 0.2, %v1017_v24  ;;  %v519_v27 = vmul.f32 0.2, %v1033_v25  ;;  %v374_v28 = vpop.f32.mrb[1].mxu0  ;;  %v438_v29 = vpop.f32.mrb[1].mxu1 }
  0xfb   : > { %v501_v30 = vmul.f32 0.2, %v374_v28  ;;  %v517_v31 = vmul.f32 0.2, %v438_v29  ;;  %v1018_v32 = vpop.f32.mrb[2].mxu0  ;;  %v1034_v33 = vpop.f32.mrb[2].mxu1 }
  0xfc   : > { %v504_v34 = vmul.f32 0.2, %v1018_v32  ;;  %v520_v35 = vmul.f32 0.2, %v1034_v33  ;;  %v377_v36 = vpop.f32.mrb[3].mxu0  ;;  %v441_v37 = vpop.f32.mrb[3].mxu1  ;;  %v535_v40 = vmax.f32 %v1017_v24, %v503_v26  ;;  %v551_v41 = vmax.f32 %v1033_v25, %v519_v27 }
  0xfd   : > { %v502_v38 = vmul.f32 0.2, %v377_v36  ;;  %v518_v39 = vmul.f32 0.2, %v441_v37  ;;  %v533_v44 = vmax.f32 %v374_v28, %v501_v30  ;;  %v549_v45 = vmax.f32 %v438_v29, %v517_v31 }
  0xfe   : > { %v536_v42 = vmax.f32 %v1018_v32, %v504_v34  ;;  %v552_v43 = vmax.f32 %v1034_v33, %v520_v35 }
  0xff   : > { %v534_v46 = vmax.f32 %v377_v36, %v502_v38  ;;  %v550_v47 = vmax.f32 %v441_v37, %v518_v39 }
 0x100   : > { %v888_v48 = vpack.c.bf16 %v536_v42, %v535_v40  ;;  %v928_v49 = vpack.c.bf16 %v552_v43, %v551_v41 }
 0x101   : > { %v883_v50 = vpack.c.bf16 %v534_v46, %v533_v44  ;;  %v923_v51 = vpack.c.bf16 %v550_v47, %v549_v45  ;;  %v1021_v52 = vpop.f32.mrb[4].mxu0  ;;  %v1037_v53 = vpop.f32.mrb[4].mxu1 }
 0x102   : > { %960 = vst [vmem:[%s1181_s6 + $0x8] sm:$0xff] %v888_v48   ;;  %968 = vst [vmem:[%s1181_s6 + $0x48] sm:$0xff] %v928_v49   ;;  %v507_v54 = vmul.f32 0.2, %v1021_v52  ;;  %v523_v55 = vmul.f32 0.2, %v1037_v53 }
 0x103   : > { %v390_v56 = vpop.f32.mrb[5].mxu0  ;;  %v454_v57 = vpop.f32.mrb[5].mxu1  ;;  %884 = vst [vmem:[%s1181_s6] sm:$0xff] %v883_v50   ;;  %967 = vst [vmem:[%s1181_s6 + $0x40] sm:$0xff] %v923_v51  }
 0x104   : > { %v505_v58 = vmul.f32 0.2, %v390_v56  ;;  %v521_v59 = vmul.f32 0.2, %v454_v57  ;;  %v1022_v60 = vpop.f32.mrb[6].mxu0  ;;  %v1038_v61 = vpop.f32.mrb[6].mxu1  ;;  %v539_v4 = vmax.f32 %v1021_v52, %v507_v54  ;;  %v555_v5 = vmax.f32 %v1037_v53, %v523_v55 }
 0x105   : > { %v508_v62 = vmul.f32 0.2, %v1022_v60  ;;  %v524_v63 = vmul.f32 0.2, %v1038_v61  ;;  %v393_v0 = vpop.f32.mrb[7].mxu0  ;;  %v457_v1 = vpop.f32.mrb[7].mxu1 }
 0x106   : > { %v506_v2 = vmul.f32 0.2, %v393_v0  ;;  %v522_v3 = vmul.f32 0.2, %v457_v1  ;;  %v537_v8 = vmax.f32 %v390_v56, %v505_v58  ;;  %v553_v9 = vmax.f32 %v454_v57, %v521_v59 }
 0x107   : > { %v540_v6 = vmax.f32 %v1022_v60, %v508_v62  ;;  %v556_v7 = vmax.f32 %v1038_v61, %v524_v63 }
 0x108   : > { %v538_v10 = vmax.f32 %v393_v0, %v506_v2  ;;  %v554_v11 = vmax.f32 %v457_v1, %v522_v3 }
 0x109   : > { %v898_v12 = vpack.c.bf16 %v540_v6, %v539_v4  ;;  %v938_v13 = vpack.c.bf16 %v556_v7, %v555_v5  ;;  %v1025_v16 = vpop.f32.mrb[8].mxu0  ;;  %v1041_v17 = vpop.f32.mrb[8].mxu1 }
 0x10a   : > { %v893_v14 = vpack.c.bf16 %v538_v10, %v537_v8  ;;  %v933_v15 = vpack.c.bf16 %v554_v11, %v553_v9  ;;  %v511_v18 = vmul.f32 0.2, %v1025_v16  ;;  %v527_v19 = vmul.f32 0.2, %v1041_v17  ;;  %v406_v20 = vpop.f32.mrb[9].mxu0  ;;  %v470_v21 = vpop.f32.mrb[9].mxu1 }
 0x10b   : > { %962 = vst [vmem:[%s1181_s6 + $0x18] sm:$0xff] %v898_v12   ;;  %970 = vst [vmem:[%s1181_s6 + $0x58] sm:$0xff] %v938_v13   ;;  %v509_v22 = vmul.f32 0.2, %v406_v20  ;;  %v525_v23 = vmul.f32 0.2, %v470_v21 }
 0x10c   : > { %961 = vst [vmem:[%s1181_s6 + $0x10] sm:$0xff] %v893_v14   ;;  %969 = vst [vmem:[%s1181_s6 + $0x50] sm:$0xff] %v933_v15   ;;  %v1026_v24 = vpop.f32.mrb[10].mxu0  ;;  %v1042_v25 = vpop.f32.mrb[10].mxu1  ;;  %v543_v32 = vmax.f32 %v1025_v16, %v511_v18  ;;  %v559_v33 = vmax.f32 %v1041_v17, %v527_v19 }
 0x10d   : > { %v512_v26 = vmul.f32 0.2, %v1026_v24  ;;  %v528_v27 = vmul.f32 0.2, %v1042_v25  ;;  %v409_v28 = vpop.f32.mrb[11].mxu0  ;;  %v473_v29 = vpop.f32.mrb[11].mxu1  ;;  %v541_v36 = vmax.f32 %v406_v20, %v509_v22  ;;  %v557_v37 = vmax.f32 %v470_v21, %v525_v23 }
 0x10e   : > { %v510_v30 = vmul.f32 0.2, %v409_v28  ;;  %v526_v31 = vmul.f32 0.2, %v473_v29 }
 0x10f   : > { %v544_v34 = vmax.f32 %v1026_v24, %v512_v26  ;;  %v560_v35 = vmax.f32 %v1042_v25, %v528_v27 }
 0x110   : > { %v542_v38 = vmax.f32 %v409_v28, %v510_v30  ;;  %v558_v39 = vmax.f32 %v473_v29, %v526_v31 }
 0x111   : > { %v908_v40 = vpack.c.bf16 %v544_v34, %v543_v32  ;;  %v948_v41 = vpack.c.bf16 %v560_v35, %v559_v33  ;;  %v1029_v44 = vpop.f32.mrb[12].mxu0  ;;  %v1045_v45 = vpop.f32.mrb[12].mxu1 }
 0x112   : > { %v903_v42 = vpack.c.bf16 %v542_v38, %v541_v36  ;;  %v943_v43 = vpack.c.bf16 %v558_v39, %v557_v37  ;;  %v515_v46 = vmul.f32 0.2, %v1029_v44  ;;  %v531_v47 = vmul.f32 0.2, %v1045_v45  ;;  %v422_v48 = vpop.f32.mrb[13].mxu0  ;;  %v486_v49 = vpop.f32.mrb[13].mxu1 }
 0x113   : > { %964 = vst [vmem:[%s1181_s6 + $0x28] sm:$0xff] %v908_v40   ;;  %972 = vst [vmem:[%s1181_s6 + $0x68] sm:$0xff] %v948_v41   ;;  %v513_v50 = vmul.f32 0.2, %v422_v48  ;;  %v529_v51 = vmul.f32 0.2, %v486_v49 }
 0x114   : > { %963 = vst [vmem:[%s1181_s6 + $0x20] sm:$0xff] %v903_v42   ;;  %971 = vst [vmem:[%s1181_s6 + $0x60] sm:$0xff] %v943_v43   ;;  %v1030_v52 = vpop.f32.mrb[14].mxu0  ;;  %v1046_v53 = vpop.f32.mrb[14].mxu1  ;;  %v547_v60 = vmax.f32 %v1029_v44, %v515_v46  ;;  %v563_v61 = vmax.f32 %v1045_v45, %v531_v47 }
 0x115   : > { %v516_v54 = vmul.f32 0.2, %v1030_v52  ;;  %v532_v55 = vmul.f32 0.2, %v1046_v53  ;;  %v425_v56 = vpop.f32.mrb[15].mxu0  ;;  %v489_v57 = vpop.f32.mrb[15].mxu1  ;;  %v545_v0 = vmax.f32 %v422_v48, %v513_v50  ;;  %v561_v1 = vmax.f32 %v486_v49, %v529_v51 }
 0x116   : > { %v514_v58 = vmul.f32 0.2, %v425_v56  ;;  %v530_v59 = vmul.f32 0.2, %v489_v57 }
 0x117   : > { %v548_v62 = vmax.f32 %v1030_v52, %v516_v54  ;;  %v564_v63 = vmax.f32 %v1046_v53, %v532_v55 }
 0x118   : > { %v546_v2 = vmax.f32 %v425_v56, %v514_v58  ;;  %v562_v3 = vmax.f32 %v489_v57, %v530_v59 }
 0x119   : > { %v918_v4 = vpack.c.bf16 %v548_v62, %v547_v60  ;;  %v958_v5 = vpack.c.bf16 %v564_v63, %v563_v61 }
 0x11a   : > { %v913_v6 = vpack.c.bf16 %v546_v2, %v545_v0  ;;  %v953_v7 = vpack.c.bf16 %v562_v3, %v561_v1 }
 0x11b   : > { %966 = vst [vmem:[%s1181_s6 + $0x38] sm:$0xff] %v918_v4   ;;  %974 = vst [vmem:[%s1181_s6 + $0x78] sm:$0xff] %v958_v5  }
 0x11c   : > { %965 = vst [vmem:[%s1181_s6 + $0x30] sm:$0xff] %v913_v6   ;;  %973 = vst [vmem:[%s1181_s6 + $0x70] sm:$0xff] %v953_v7  }
 0x11d PF: > { %s12_s9 = sadd.s32 1, %s1101_s9  }
 0x11e   : > { %p9_p4 = scmp.ge.s32.totalorder %s12_s9, 4  }
 0x120   :  { %11 = sbr.rel (!%p9_p4) target bundleno = 1 (0x1), region = 58 }

// kernel: netD_forward.8
= control target key start
LH: loop header
LB: loop body
LE: loop exit
PB: predicated region body
PF: predicated region fallthrough
CT: control target
= control target key end

     0   :  { %s438_s0 = inlined_call_operand.vmem [shape: bf16[128,128], index: 0, kind: input, shape index: {}]   ;;  %s439_s1 = inlined_call_operand.vmem [shape: f32[1,128], index: 1, kind: input, shape index: {}]   ;;  %s440_s2 = inlined_call_operand.vmem [shape: f32[1,128], index: 2, kind: input, shape index: {}]   ;;  %s441_s3 = inlined_call_operand.vmem [shape: bf16[128,128], index: 3, kind: output, shape index: {}]  }
   0x1   :  { %v243_v0 = vld [vmem:[%s438_s0] sm:$0xff]   ;;  %v314_v4 = vld [vmem:[%s438_s0 + $0x8] sm:$0xff]   ;;  %v315_v5 = vld [vmem:[%s438_s0 + $0x10] sm:$0xff]  }
   0x2   :  { %v354_v1 = vld [vmem:[%s439_s1] ss:$0 sm:$0xff]  ;;  %v244_v2 = vunpack.c.l.bf16 %v243_v0  ;;  %v245_v3 = vunpack.c.h.bf16 %v243_v0  ;;  %v316_v6 = vld [vmem:[%s438_s0 + $0x18] sm:$0xff]   ;;  %v248_v8 = vunpack.c.l.bf16 %v314_v4  ;;  %v249_v9 = vunpack.c.h.bf16 %v314_v4  ;;  %v318_v41 = vld [vmem:[%s438_s0 + $0x28] sm:$0xff]  }
   0x3   :  { %v368_v7 = vld [vmem:[%s440_s2] ss:$0 sm:$0xff]  ;;  %v252_v10 = vunpack.c.l.bf16 %v315_v5  ;;  %v253_v11 = vunpack.c.h.bf16 %v315_v5  ;;  %v256_v14 = vunpack.c.l.bf16 %v316_v6  ;;  %v257_v15 = vunpack.c.h.bf16 %v316_v6  ;;  %v319_v46 = vld [vmem:[%s438_s0 + $0x30] sm:$0xff]   ;;  %v320_v55 = vld [vmem:[%s438_s0 + $0x38] sm:$0xff]  }
   0x4   :  { %v53_v12 = vmul.f32 %v244_v2, %v354_v1  ;;  %v54_v13 = vmul.f32 %v245_v3, %v354_v1  ;;  %v55_v16 = vmul.f32 %v248_v8, %v354_v1  ;;  %v56_v17 = vmul.f32 %v249_v9, %v354_v1  ;;  %v317_v24 = vld [vmem:[%s438_s0 + $0x20] sm:$0xff]  }
   0x5   :  { %v57_v18 = vmul.f32 %v252_v10, %v354_v1  ;;  %v58_v19 = vmul.f32 %v253_v11, %v354_v1  ;;  %v59_v22 = vmul.f32 %v256_v14, %v354_v1  ;;  %v60_v23 = vmul.f32 %v257_v15, %v354_v1 }
   0x6   :  { %v76_v20 = vadd.f32 %v368_v7, %v53_v12  ;;  %v77_v21 = vadd.f32 %v368_v7, %v54_v13  ;;  %v78_v25 = vadd.f32 %v368_v7, %v55_v16  ;;  %v79_v26 = vadd.f32 %v368_v7, %v56_v17 }
   0x7   :  { %v80_v27 = vadd.f32 %v368_v7, %v57_v18  ;;  %v81_v28 = vadd.f32 %v368_v7, %v58_v19  ;;  %v82_v31 = vadd.f32 %v368_v7, %v59_v22  ;;  %v83_v32 = vadd.f32 %v368_v7, %v60_v23 }
   0x8   :  { %v92_v29 = vmul.f32 0.2, %v76_v20  ;;  %v93_v30 = vmul.f32 0.2, %v77_v21  ;;  %v94_v33 = vmul.f32 0.2, %v78_v25  ;;  %v260_v36 = vunpack.c.l.bf16 %v317_v24 }
   0x9   :  { %v95_v34 = vmul.f32 0.2, %v79_v26  ;;  %v96_v35 = vmul.f32 0.2, %v80_v27  ;;  %v97_v39 = vmul.f32 0.2, %v81_v28  ;;  %v261_v50 = vunpack.c.h.bf16 %v317_v24 }
   0xa   :  { %v108_v37 = vmax.f32 %v76_v20, %v92_v29  ;;  %v109_v38 = vmax.f32 %v77_v21, %v93_v30  ;;  %v98_v40 = vmul.f32 0.2, %v82_v31  ;;  %v110_v42 = vmax.f32 %v78_v25, %v94_v33 }
   0xb   :  { %v111_v43 = vmax.f32 %v79_v26, %v95_v34  ;;  %v112_v44 = vmax.f32 %v80_v27, %v96_v35  ;;  %v99_v45 = vmul.f32 0.2, %v83_v32  ;;  %v113_v48 = vmax.f32 %v81_v28, %v97_v39 }
   0xc   :  { %v277_v47 = vpack.c.bf16 %v109_v38, %v108_v37  ;;  %v114_v49 = vmax.f32 %v82_v31, %v98_v40  ;;  %v61_v53 = vmul.f32 %v260_v36, %v354_v1  ;;  %v264_v54 = vunpack.c.l.bf16 %v318_v41 }
   0xd   :  { %v282_v51 = vpack.c.bf16 %v111_v43, %v110_v42  ;;  %v115_v52 = vmax.f32 %v83_v32, %v99_v45  ;;  %v287_v56 = vpack.c.bf16 %v113_v48, %v112_v44  ;;  %v62_v57 = vmul.f32 %v261_v50, %v354_v1 }
   0xe   :  { %278 = vst [vmem:[%s441_s3] sm:$0xff] %v277_v47   ;;  %v265_v58 = vunpack.c.h.bf16 %v318_v41  ;;  %v268_v59 = vunpack.c.l.bf16 %v319_v46  ;;  %v84_v61 = vadd.f32 %v368_v7, %v61_v53  ;;  %v63_v62 = vmul.f32 %v264_v54, %v354_v1 }
   0xf   :  { %321 = vst [vmem:[%s441_s3 + $0x8] sm:$0xff] %v282_v51   ;;  %v292_v60 = vpack.c.bf16 %v115_v52, %v114_v49  ;;  %v269_v63 = vunpack.c.h.bf16 %v319_v46  ;;  %322 = vst [vmem:[%s441_s3 + $0x10] sm:$0xff] %v287_v56   ;;  %v85_v0 = vadd.f32 %v368_v7, %v62_v57  ;;  %v272_v4 = vunpack.c.l.bf16 %v320_v55 }
  0x10   :  { %v64_v2 = vmul.f32 %v265_v58, %v354_v1  ;;  %v65_v3 = vmul.f32 %v268_v59, %v354_v1  ;;  %v100_v5 = vmul.f32 0.2, %v84_v61  ;;  %v86_v6 = vadd.f32 %v368_v7, %v63_v62 }
  0x11   :  { %323 = vst [vmem:[%s441_s3 + $0x18] sm:$0xff] %v292_v60   ;;  %v66_v8 = vmul.f32 %v269_v63, %v354_v1  ;;  %v273_v9 = vunpack.c.h.bf16 %v320_v55  ;;  %v101_v10 = vmul.f32 0.2, %v85_v0  ;;  %v67_v13 = vmul.f32 %v272_v4, %v354_v1 }
  0x12   :  { %v87_v11 = vadd.f32 %v368_v7, %v64_v2  ;;  %v88_v12 = vadd.f32 %v368_v7, %v65_v3  ;;  %v116_v14 = vmax.f32 %v84_v61, %v100_v5  ;;  %v102_v15 = vmul.f32 0.2, %v86_v6 }
  0x13   :  { %v89_v16 = vadd.f32 %v368_v7, %v66_v8  ;;  %v68_v17 = vmul.f32 %v273_v9, %v354_v1  ;;  %v117_v18 = vmax.f32 %v85_v0, %v101_v10  ;;  %v90_v21 = vadd.f32 %v368_v7, %v67_v13 }
  0x14   :  { %v103_v19 = vmul.f32 0.2, %v87_v11  ;;  %v104_v20 = vmul.f32 0.2, %v88_v12  ;;  %v118_v22 = vmax.f32 %v86_v6, %v102_v15 }
  0x15   :  { %v105_v23 = vmul.f32 0.2, %v89_v16  ;;  %v91_v24 = vadd.f32 %v368_v7, %v68_v17  ;;  %v297_v25 = vpack.c.bf16 %v117_v18, %v116_v14  ;;  %v106_v28 = vmul.f32 0.2, %v90_v21 }
  0x16   :  { %v119_v26 = vmax.f32 %v87_v11, %v103_v19  ;;  %v120_v27 = vmax.f32 %v88_v12, %v104_v20 }
  0x17   :  { %v121_v29 = vmax.f32 %v89_v16, %v105_v23  ;;  %v107_v30 = vmul.f32 0.2, %v91_v24  ;;  %324 = vst [vmem:[%s441_s3 + $0x20] sm:$0xff] %v297_v25   ;;  %v122_v31 = vmax.f32 %v90_v21, %v106_v28 }
  0x18   :  { %v302_v1 = vpack.c.bf16 %v119_v26, %v118_v22 }
  0x19   :  { %v307_v32 = vpack.c.bf16 %v121_v29, %v120_v27  ;;  %v123_v33 = vmax.f32 %v91_v24, %v107_v30 }
  0x1a   :  { %325 = vst [vmem:[%s441_s3 + $0x28] sm:$0xff] %v302_v1  }
  0x1b   :  { %326 = vst [vmem:[%s441_s3 + $0x30] sm:$0xff] %v307_v32   ;;  %v312_v7 = vpack.c.bf16 %v123_v33, %v122_v31 }
  0x1d   :  { %327 = vst [vmem:[%s441_s3 + $0x38] sm:$0xff] %v312_v7  }

// kernel: netD_forward.7
= control target key start
LH: loop header
LB: loop body
LE: loop exit
PB: predicated region body
PF: predicated region fallthrough
CT: control target
= control target key end

     0   :  { %s670_s1 = inlined_call_operand.vmem [shape: bf16[128,128], index: 1, kind: input, shape index: {}]   ;;  %s671_s0 = inlined_call_operand.vmem [shape: bf16[128,128], index: 0, kind: input, shape index: {}]   ;;  %s672_s2 = inlined_call_operand.vmem [shape: bf16[128,128], index: 2, kind: output, shape index: {0}]   ;;  %s673_s3 = inlined_call_operand.vmem [shape: f32[1,1,128], index: 3, kind: output, shape index: {1}]   ;;  %s674_s4 = inlined_call_operand.vmem [shape: f32[1,1,128], index: 4, kind: output, shape index: {2}]  }
   0x1   :  { %v551_v0 = vld [vmem:[%s670_s1] sm:$0xff]   ;;  %v552_v1 = vld [vmem:[%s670_s1 + $0x8] sm:$0xff]   ;;  %v553_v2 = vld [vmem:[%s670_s1 + $0x10] sm:$0xff]  }
   0x2   :  { %503 = vmatprep.subr.bf16.mxu0 %v551_v0  ;;  %535 = vmatprep.subr.bf16.mxu1 %v551_v0  ;;  %v554_v3 = vld [vmem:[%s670_s1 + $0x18] sm:$0xff]   ;;  %v559_v4 = vld [vmem:[%s671_s0] sm:$0xff]   ;;  %v556_v7 = vld [vmem:[%s670_s1 + $0x28] sm:$0xff]  }
   0x3   :  { %504 = vmatpush3.bf16.msra.mxu0 %v551_v0  ;;  %543 = vmatpush3.bf16.msra.mxu1 %v551_v0  ;;  %v555_v5 = vld [vmem:[%s670_s1 + $0x20] sm:$0xff]   ;;  %v557_v8 = vld [vmem:[%s670_s1 + $0x30] sm:$0xff]   ;;  %v558_v9 = vld [vmem:[%s670_s1 + $0x38] sm:$0xff]  }
   0x4   :  { %505 = vmatprep.subr.bf16.mxu0 %v552_v1  ;;  %536 = vmatprep.subr.bf16.mxu1 %v552_v1  ;;  %v563_v6 = vld [vmem:[%s671_s0 + $0x20] sm:$0xff]   ;;  %v560_v10 = vld [vmem:[%s671_s0 + $0x8] sm:$0xff]   ;;  %v561_v12 = vld [vmem:[%s671_s0 + $0x10] sm:$0xff]  }
   0x5   :  { %519 = vmatprep.mubr.bf16.mxu0 %v559_v4  ;;  %527 = vmatprep.mubr.bf16.mxu1 %v563_v6  ;;  %v564_v11 = vld [vmem:[%s671_s0 + $0x28] sm:$0xff]   ;;  %v565_v13 = vld [vmem:[%s671_s0 + $0x30] sm:$0xff]   ;;  %v562_v14 = vld [vmem:[%s671_s0 + $0x18] sm:$0xff]  }
   0x6   :  { %v566_v15 = vld [vmem:[%s671_s0 + $0x38] sm:$0xff]  }
   0x7   :  { %506 = vmatpush3.bf16.msra.mxu0 %v552_v1  ;;  %544 = vmatpush3.bf16.msra.mxu1 %v552_v1 }
   0x8   :  { %507 = vmatprep.subr.bf16.mxu0 %v553_v2  ;;  %537 = vmatprep.subr.bf16.mxu1 %v553_v2 }
   0xb   :  { %508 = vmatpush3.bf16.msra.mxu0 %v553_v2  ;;  %545 = vmatpush3.bf16.msra.mxu1 %v553_v2 }
   0xc   :  { %509 = vmatprep.subr.bf16.mxu0 %v554_v3  ;;  %538 = vmatprep.subr.bf16.mxu1 %v554_v3 }
   0xf   :  { %510 = vmatpush3.bf16.msra.mxu0 %v554_v3  ;;  %546 = vmatpush3.bf16.msra.mxu1 %v554_v3 }
  0x10   :  { %511 = vmatprep.subr.bf16.mxu0 %v555_v5  ;;  %539 = vmatprep.subr.bf16.mxu1 %v555_v5 }
  0x13   :  { %512 = vmatpush3.bf16.msra.mxu0 %v555_v5  ;;  %547 = vmatpush3.bf16.msra.mxu1 %v555_v5 }
  0x14   :  { %513 = vmatprep.subr.bf16.mxu0 %v556_v7  ;;  %540 = vmatprep.subr.bf16.mxu1 %v556_v7 }
  0x17   :  { %514 = vmatpush3.bf16.msra.mxu0 %v556_v7  ;;  %548 = vmatpush3.bf16.msra.mxu1 %v556_v7 }
  0x18   :  { %515 = vmatprep.subr.bf16.mxu0 %v557_v8  ;;  %541 = vmatprep.subr.bf16.mxu1 %v557_v8 }
  0x1b   :  { %516 = vmatpush3.bf16.msra.mxu0 %v557_v8  ;;  %549 = vmatpush3.bf16.msra.mxu1 %v557_v8 }
  0x1c   :  { %517 = vmatprep.subr.bf16.mxu0 %v558_v9  ;;  %542 = vmatprep.subr.bf16.mxu1 %v558_v9 }
  0x1f   :  { %518 = vmatpush3.bf16.msra.mxu0 %v558_v9  ;;  %550 = vmatpush3.bf16.msra.mxu1 %v558_v9 }
  0x22   :  { %520 = vmatmul.mubr.bf16.vlgmr.msra.gmra.mrb[0].mxu0 %v560_v10  ;;  %528 = vmatmul.mubr.bf16.vlgmr.msra.gmra.mrb[0].mxu1 %v564_v11 }
  0x23   :  { %523 = vmatprep.mubr.bf16.mxu0 %v561_v12  ;;  %531 = vmatprep.mubr.bf16.mxu1 %v565_v13 }
  0x2a   :  { %524 = vmatmul.mubr.bf16.gmra.mrb[4].mxu0 %v562_v14  ;;  %532 = vmatmul.mubr.bf16.gmra.mrb[4].mxu1 %v566_v15 }
  0xf5   :  { %v521_v16 = vpop.f32.mrb[0].mxu0  ;;  %v529_v17 = vpop.f32.mrb[0].mxu1 }
  0xf6   :  { %v177_v18 = vpop.f32.mrb[1].mxu0  ;;  %v209_v19 = vpop.f32.mrb[1].mxu1  ;;  %v344_v31 = vmul.f32 %v521_v16, %v521_v16  ;;  %v352_v3 = vmul.f32 %v529_v17, %v529_v17 }
  0xf7   :  { %v522_v20 = vpop.f32.mrb[2].mxu0  ;;  %v530_v21 = vpop.f32.mrb[2].mxu1  ;;  %v342_v22 = vmul.f32 %v177_v18, %v177_v18  ;;  %v350_v61 = vmul.f32 %v209_v19, %v209_v19 }
  0xf8   :  { %v448_v23 = vpack.c.bf16 %v522_v20, %v521_v16  ;;  %v180_v24 = vpop.f32.mrb[3].mxu0  ;;  %v468_v25 = vpack.c.bf16 %v530_v21, %v529_v17  ;;  %v212_v26 = vpop.f32.mrb[3].mxu1  ;;  %v345_v34 = vmul.f32 %v522_v20, %v522_v20  ;;  %v353_v6 = vmul.f32 %v530_v21, %v530_v21 }
  0xf9   :  { %v443_v27 = vpack.c.bf16 %v180_v24, %v177_v18  ;;  %v320_v28 = vadd.f32 %v180_v24, %v177_v18  ;;  %v343_v29 = vmul.f32 %v180_v24, %v180_v24  ;;  %v463_v30 = vpack.c.bf16 %v212_v26, %v209_v19 }
  0xfa   :  { %480 = vst [vmem:[%s672_s2 + $0x8] sm:$0xff] %v448_v23   ;;  %484 = vst [vmem:[%s672_s2 + $0x28] sm:$0xff] %v468_v25   ;;  %v351_v2 = vmul.f32 %v212_v26, %v212_v26 }
  0xfb   :  { %444 = vst [vmem:[%s672_s2] sm:$0xff] %v443_v27   ;;  %v321_v32 = vadd.f32 %v521_v16, %v320_v28  ;;  %v358_v33 = vadd.f32 %v343_v29, %v342_v22  ;;  %483 = vst [vmem:[%s672_s2 + $0x20] sm:$0xff] %v463_v30  }
  0xfd   :  { %v359_v35 = vadd.f32 %v358_v33, %v344_v31  ;;  %v525_v36 = vpop.f32.mrb[4].mxu0  ;;  %v322_v37 = vadd.f32 %v522_v20, %v321_v32  ;;  %v533_v38 = vpop.f32.mrb[4].mxu1 }
  0xfe   :  { %v193_v39 = vpop.f32.mrb[5].mxu0  ;;  %v225_v40 = vpop.f32.mrb[5].mxu1  ;;  %v348_v55 = vmul.f32 %v525_v36, %v525_v36  ;;  %v356_v15 = vmul.f32 %v533_v38, %v533_v38 }
  0xff   :  { %v323_v41 = vadd.f32 %v322_v37, %v193_v39  ;;  %v346_v42 = vmul.f32 %v193_v39, %v193_v39  ;;  %v360_v43 = vadd.f32 %v359_v35, %v345_v34  ;;  %v526_v44 = vpop.f32.mrb[6].mxu0  ;;  %v534_v45 = vpop.f32.mrb[6].mxu1  ;;  %v354_v9 = vmul.f32 %v225_v40, %v225_v40 }
 0x100   :  { %v458_v46 = vpack.c.bf16 %v526_v44, %v525_v36  ;;  %v196_v47 = vpop.f32.mrb[7].mxu0  ;;  %v478_v48 = vpack.c.bf16 %v534_v45, %v533_v38  ;;  %v228_v49 = vpop.f32.mrb[7].mxu1  ;;  %v349_v58 = vmul.f32 %v526_v44, %v526_v44 }
 0x101   :  { %v361_v50 = vadd.f32 %v360_v43, %v346_v42  ;;  %v453_v51 = vpack.c.bf16 %v196_v47, %v193_v39  ;;  %v324_v52 = vadd.f32 %v323_v41, %v196_v47  ;;  %v347_v53 = vmul.f32 %v196_v47, %v196_v47 }
 0x102   :  { %482 = vst [vmem:[%s672_s2 + $0x18] sm:$0xff] %v458_v46   ;;  %486 = vst [vmem:[%s672_s2 + $0x38] sm:$0xff] %v478_v48   ;;  %v473_v54 = vpack.c.bf16 %v228_v49, %v225_v40  ;;  %v355_v14 = vmul.f32 %v228_v49, %v228_v49 }
 0x103   :  { %481 = vst [vmem:[%s672_s2 + $0x10] sm:$0xff] %v453_v51   ;;  %v325_v56 = vadd.f32 %v525_v36, %v324_v52  ;;  %v362_v57 = vadd.f32 %v361_v50, %v347_v53 }
 0x104   :  { %485 = vst [vmem:[%s672_s2 + $0x30] sm:$0xff] %v473_v54  }
 0x105   :  { %v363_v59 = vadd.f32 %v362_v57, %v348_v55  ;;  %v326_v60 = vadd.f32 %v526_v44, %v325_v56 }
 0x107   :  { %v327_v62 = vadd.f32 %v326_v60, %v209_v19  ;;  %v364_v63 = vadd.f32 %v363_v59, %v349_v58  ;;  %v357_v19 = vmul.f32 %v534_v45, %v534_v45 }
 0x109   :  { %v365_v0 = vadd.f32 %v364_v63, %v350_v61  ;;  %v328_v1 = vadd.f32 %v327_v62, %v212_v26 }
 0x10b   :  { %v329_v4 = vadd.f32 %v529_v17, %v328_v1  ;;  %v366_v5 = vadd.f32 %v365_v0, %v351_v2 }
 0x10d   :  { %v367_v7 = vadd.f32 %v366_v5, %v352_v3  ;;  %v330_v8 = vadd.f32 %v530_v21, %v329_v4 }
 0x10f   :  { %v331_v10 = vadd.f32 %v330_v8, %v225_v40  ;;  %v368_v11 = vadd.f32 %v367_v7, %v353_v6 }
 0x111   :  { %v369_v12 = vadd.f32 %v368_v11, %v354_v9  ;;  %v332_v13 = vadd.f32 %v331_v10, %v228_v49 }
 0x113   :  { %v333_v16 = vadd.f32 %v533_v38, %v332_v13  ;;  %v370_v18 = vadd.f32 %v369_v12, %v355_v14 }
 0x115   :  { %v334_v20 = vadd.f32 %v534_v45, %v333_v16  ;;  %v371_v22 = vadd.f32 %v370_v18, %v356_v15 }
 0x117   :  { %v335_v23 = vrot.slane %v334_v20, 4  ;;  %v372_v24 = vadd.f32 %v371_v22, %v357_v19 }
 0x119   :  { %v336_v25 = vadd.f32 %v335_v23, %v334_v20  ;;  %v373_v17 = vrot.slane %v372_v24, 4 }
 0x11b   :  { %v337_v26 = vrot.slane %v336_v25, 2  ;;  %v374_v27 = vadd.f32 %v373_v17, %v372_v24 }
 0x11d   :  { %v338_v28 = vadd.f32 %v337_v26, %v336_v25  ;;  %v375_v21 = vrot.slane %v374_v27, 2 }
 0x11f   :  { %v339_v29 = vrot.slane %v338_v28, 1  ;;  %v376_v30 = vadd.f32 %v375_v21, %v374_v27 }
 0x121   :  { %v340_v31 = vadd.f32 %v339_v29, %v338_v28  ;;  %v377_v32 = vrot.slane %v376_v30, 1 }
 0x123   :  { %341 = vst [vmem:[%s673_s3] sm:$0x1] %v340_v31  ;;  %v378_v33 = vadd.f32 %v377_v32, %v376_v30 }
 0x125   :  { %379 = vst [vmem:[%s674_s4] sm:$0x1] %v378_v33 }

// kernel: netD_forward.9
= control target key start
LH: loop header
LB: loop body
LE: loop exit
PB: predicated region body
PF: predicated region fallthrough
CT: control target
= control target key end

     0   :  { %s474_s1 = inlined_call_operand.vmem [shape: bf16[256,128], index: 1, kind: input, shape index: {}]   ;;  %s475_s0 = inlined_call_operand.vmem [shape: bf16[32,256], index: 0, kind: input, shape index: {}]   ;;  %s476_s2 = inlined_call_operand.vmem [shape: bf16[32,128], index: 2, kind: output, shape index: {0}]   ;;  %s477_s3 = inlined_call_operand.vmem [shape: f32[1,1,128], index: 3, kind: output, shape index: {1}]   ;;  %s478_s4 = inlined_call_operand.vmem [shape: f32[1,1,128], index: 4, kind: output, shape index: {2}]  }
   0x1   :  { %v355_v0 = vld [vmem:[%s474_s1 + $0x40] sm:$0xff]   ;;  %v357_v2 = vld [vmem:[%s474_s1 + $0x48] sm:$0xff]   ;;  %v359_v4 = vld [vmem:[%s474_s1 + $0x50] sm:$0xff]  }
   0x2   :  { %v356_v1 = vld [vmem:[%s474_s1] sm:$0xff]   ;;  %311 = vmatprep.subr.bf16.mxu0 %v355_v0  ;;  %339 = vmatprep.subr.bf16.mxu1 %v355_v0  ;;  %v358_v3 = vld [vmem:[%s474_s1 + $0x8] sm:$0xff]   ;;  %v360_v5 = vld [vmem:[%s474_s1 + $0x10] sm:$0xff]  }
   0x3   :  { %312 = vmatpush3.bf16.msra.mxu0 %v356_v1  ;;  %347 = vmatpush3.bf16.msra.mxu1 %v356_v1  ;;  %v361_v6 = vld [vmem:[%s474_s1 + $0x58] sm:$0xff]   ;;  %v363_v8 = vld [vmem:[%s474_s1 + $0x60] sm:$0xff]   ;;  %v365_v10 = vld [vmem:[%s474_s1 + $0x68] sm:$0xff]  }
   0x4   :  { %313 = vmatprep.subr.bf16.mxu0 %v357_v2  ;;  %340 = vmatprep.subr.bf16.mxu1 %v357_v2  ;;  %v362_v7 = vld [vmem:[%s474_s1 + $0x18] sm:$0xff]   ;;  %v364_v9 = vld [vmem:[%s474_s1 + $0x20] sm:$0xff]   ;;  %v366_v13 = vld [vmem:[%s474_s1 + $0x28] sm:$0xff]  }
   0x5   :  { %v373_v11 = vld [vmem:[%s475_s0 + $0x4] ss:$8 sps:$4 sm:$0xff]   ;;  %v376_v12 = vld [vmem:[%s475_s0 + $0x14] ss:$8 sps:$4 sm:$0xff]   ;;  %v371_v18 = vld [vmem:[%s475_s0] ss:$8 sps:$4 sm:$0xff]  }
   0x6   :  { %v367_v14 = vld [vmem:[%s474_s1 + $0x70] sm:$0xff]   ;;  %199 = vmatprep.mubr.bf16.mxu0 %v373_v11  ;;  %207 = vmatprep.mubr.bf16.mxu1 %v376_v12  ;;  %v369_v16 = vld [vmem:[%s474_s1 + $0x78] sm:$0xff]  }
   0x7   :  { %314 = vmatpush3.bf16.msra.mxu0 %v358_v3  ;;  %348 = vmatpush3.bf16.msra.mxu1 %v358_v3  ;;  %v368_v15 = vld [vmem:[%s474_s1 + $0x30] sm:$0xff]   ;;  %v370_v17 = vld [vmem:[%s474_s1 + $0x38] sm:$0xff]  }
   0x8   :  { %315 = vmatprep.subr.bf16.mxu0 %v359_v4  ;;  %341 = vmatprep.subr.bf16.mxu1 %v359_v4  ;;  %v374_v19 = vld [vmem:[%s475_s0 + $0x10] ss:$8 sps:$4 sm:$0xff]  }
   0xb   :  { %316 = vmatpush3.bf16.msra.mxu0 %v360_v5  ;;  %349 = vmatpush3.bf16.msra.mxu1 %v360_v5 }
   0xc   :  { %317 = vmatprep.subr.bf16.mxu0 %v361_v6  ;;  %342 = vmatprep.subr.bf16.mxu1 %v361_v6 }
   0xf   :  { %318 = vmatpush3.bf16.msra.mxu0 %v362_v7  ;;  %350 = vmatpush3.bf16.msra.mxu1 %v362_v7 }
  0x10   :  { %319 = vmatprep.subr.bf16.mxu0 %v363_v8  ;;  %343 = vmatprep.subr.bf16.mxu1 %v363_v8 }
  0x13   :  { %320 = vmatpush3.bf16.msra.mxu0 %v364_v9  ;;  %351 = vmatpush3.bf16.msra.mxu1 %v364_v9 }
  0x14   :  { %321 = vmatprep.subr.bf16.mxu0 %v365_v10  ;;  %344 = vmatprep.subr.bf16.mxu1 %v365_v10 }
  0x17   :  { %322 = vmatpush3.bf16.msra.mxu0 %v366_v13  ;;  %352 = vmatpush3.bf16.msra.mxu1 %v366_v13 }
  0x18   :  { %323 = vmatprep.subr.bf16.mxu0 %v367_v14  ;;  %345 = vmatprep.subr.bf16.mxu1 %v367_v14 }
  0x1b   :  { %324 = vmatpush3.bf16.msra.mxu0 %v368_v15  ;;  %353 = vmatpush3.bf16.msra.mxu1 %v368_v15 }
  0x1c   :  { %325 = vmatprep.subr.bf16.mxu0 %v369_v16  ;;  %346 = vmatprep.subr.bf16.mxu1 %v369_v16 }
  0x1f   :  { %326 = vmatpush3.bf16.msra.mxu0 %v370_v17  ;;  %354 = vmatpush3.bf16.msra.mxu1 %v370_v17 }
  0x22   :  { %200 = vmatmul.mubr.bf16.vlgmr.msra.gmra.mrb[0].mxu0 %v371_v18  ;;  %208 = vmatmul.mubr.bf16.vlgmr.msra.gmra.mrb[0].mxu1 %v374_v19 }
  0xf5   :  { %v327_v20 = vpop.f32.mrb[0].mxu0  ;;  %v333_v21 = vpop.f32.mrb[0].mxu1 }
  0xf6   :  { %v328_v22 = vpop.f32.mrb[1].mxu0  ;;  %v334_v23 = vpop.f32.mrb[1].mxu1 }
  0xf7   :  { %v329_v24 = vadd.f32 %v328_v22, %v327_v20  ;;  %v330_v25 = vpop.f32.mrb[2].mxu0  ;;  %v335_v26 = vadd.f32 %v334_v23, %v333_v21  ;;  %v336_v27 = vpop.f32.mrb[2].mxu1 }
  0xf8   :  { %v331_v28 = vpop.f32.mrb[3].mxu0  ;;  %v337_v29 = vpop.f32.mrb[3].mxu1 }
  0xf9   :  { %v332_v30 = vadd.f32 %v331_v28, %v330_v25  ;;  %v338_v31 = vadd.f32 %v337_v29, %v336_v27  ;;  %v246_v32 = vmul.f32 %v329_v24, %v329_v24  ;;  %v248_v33 = vmul.f32 %v335_v26, %v335_v26 }
  0xfb   :  { %v303_v34 = vpack.c.bf16 %v332_v30, %v329_v24  ;;  %v236_v35 = vadd.f32 %v332_v30, %v329_v24  ;;  %v247_v36 = vmul.f32 %v332_v30, %v332_v30  ;;  %v308_v37 = vpack.c.bf16 %v338_v31, %v335_v26 }
  0xfc   :  { %v249_v41 = vmul.f32 %v338_v31, %v338_v31 }
  0xfd   :  { %304 = vst [vmem:[%s476_s2] sm:$0xff] %v303_v34   ;;  %v250_v38 = vadd.f32 %v247_v36, %v246_v32  ;;  %310 = vst [vmem:[%s476_s2 + $0x8] sm:$0xff] %v308_v37   ;;  %v237_v39 = vadd.f32 %v335_v26, %v236_v35 }
  0xff   :  { %v238_v40 = vadd.f32 %v338_v31, %v237_v39  ;;  %v251_v42 = vadd.f32 %v250_v38, %v248_v33 }
 0x101   :  { %v239_v43 = vrot.slane %v238_v40, 4  ;;  %v252_v44 = vadd.f32 %v251_v42, %v249_v41 }
 0x103   :  { %v240_v45 = vadd.f32 %v239_v43, %v238_v40  ;;  %v253_v46 = vrot.slane %v252_v44, 4 }
 0x105   :  { %v241_v47 = vrot.slane %v240_v45, 2  ;;  %v254_v48 = vadd.f32 %v253_v46, %v252_v44 }
 0x107   :  { %v242_v49 = vadd.f32 %v241_v47, %v240_v45  ;;  %v255_v50 = vrot.slane %v254_v48, 2 }
 0x109   :  { %v243_v51 = vrot.slane %v242_v49, 1  ;;  %v256_v52 = vadd.f32 %v255_v50, %v254_v48 }
 0x10b   :  { %v244_v53 = vadd.f32 %v243_v51, %v242_v49  ;;  %v257_v54 = vrot.slane %v256_v52, 1 }
 0x10d   :  { %245 = vst [vmem:[%s477_s3] sm:$0x1] %v244_v53  ;;  %v258_v55 = vadd.f32 %v257_v54, %v256_v52 }
 0x10f   :  { %259 = vst [vmem:[%s478_s4] sm:$0x1] %v258_v55 }

// kernel: netD_forward.10
= control target key start
LH: loop header
LB: loop body
LE: loop exit
PB: predicated region body
PF: predicated region fallthrough
CT: control target
= control target key end

     0   :  { %s144_s0 = inlined_call_operand.vmem [shape: bf16[32,128], index: 0, kind: input, shape index: {}]   ;;  %s145_s1 = inlined_call_operand.vmem [shape: f32[1,128], index: 1, kind: input, shape index: {}]   ;;  %s146_s2 = inlined_call_operand.vmem [shape: f32[1,128], index: 2, kind: input, shape index: {}]   ;;  %s147_s3 = inlined_call_operand.vmem [shape: bf16[32,128], index: 3, kind: output, shape index: {}]  }
   0x1   :  { %v87_v0 = vld [vmem:[%s144_s0] sm:$0xff]   ;;  %v104_v4 = vld [vmem:[%s144_s0 + $0x8] sm:$0xff]  }
   0x2   :  { %v76_v1 = vld [vmem:[%s145_s1] ss:$0 sm:$0xff]  ;;  %v88_v2 = vunpack.c.l.bf16 %v87_v0  ;;  %v89_v3 = vunpack.c.h.bf16 %v87_v0  ;;  %v92_v6 = vunpack.c.l.bf16 %v104_v4  ;;  %v93_v7 = vunpack.c.h.bf16 %v104_v4 }
   0x3   :  { %v77_v5 = vld [vmem:[%s146_s2] ss:$0 sm:$0xff] }
   0x4   :  { %v29_v8 = vmul.f32 %v88_v2, %v76_v1  ;;  %v30_v9 = vmul.f32 %v89_v3, %v76_v1  ;;  %v31_v10 = vmul.f32 %v92_v6, %v76_v1  ;;  %v32_v11 = vmul.f32 %v93_v7, %v76_v1 }
   0x6   :  { %v40_v12 = vadd.f32 %v77_v5, %v29_v8  ;;  %v41_v13 = vadd.f32 %v77_v5, %v30_v9  ;;  %v42_v14 = vadd.f32 %v77_v5, %v31_v10  ;;  %v43_v15 = vadd.f32 %v77_v5, %v32_v11 }
   0x8   :  { %v44_v16 = vmul.f32 0.2, %v40_v12  ;;  %v45_v17 = vmul.f32 0.2, %v41_v13  ;;  %v46_v18 = vmul.f32 0.2, %v42_v14 }
   0x9   :  { %v47_v19 = vmul.f32 0.2, %v43_v15 }
   0xa   :  { %v48_v20 = vmax.f32 %v40_v12, %v44_v16  ;;  %v49_v21 = vmax.f32 %v41_v13, %v45_v17  ;;  %v50_v22 = vmax.f32 %v42_v14, %v46_v18 }
   0xb   :  { %v51_v23 = vmax.f32 %v43_v15, %v47_v19 }
   0xc   :  { %v97_v24 = vpack.c.bf16 %v49_v21, %v48_v20 }
   0xd   :  { %v102_v25 = vpack.c.bf16 %v51_v23, %v50_v22 }
   0xe   :  { %98 = vst [vmem:[%s147_s3] sm:$0xff] %v97_v24  }
   0xf   :  { %105 = vst [vmem:[%s147_s3 + $0x8] sm:$0xff] %v102_v25  }

// kernel: netD_forward.11
= control target key start
LH: loop header
LB: loop body
LE: loop exit
PB: predicated region body
PF: predicated region fallthrough
CT: control target
= control target key end

     0   :  { %s645_s1 = inlined_call_operand.vmem [shape: bf16[512,128], index: 1, kind: input, shape index: {}]   ;;  %s646_s0 = inlined_call_operand.vmem [shape: bf16[16,512], index: 0, kind: input, shape index: {}]   ;;  %s647_s2 = inlined_call_operand.vmem [shape: f32[16,128], index: 2, kind: output, shape index: {}]  }
   0x1   :  { %v470_v0 = vld [vmem:[%s645_s1 + $0x40] sm:$0xff]   ;;  %v474_v4 = vld [vmem:[%s645_s1 + $0x48] sm:$0xff]   ;;  %v478_v8 = vld [vmem:[%s645_s1 + $0x50] sm:$0xff]  }
   0x2   :  { %v471_v1 = vld [vmem:[%s645_s1 + $0xc0] sm:$0xff]   ;;  %426 = vmatprep.subr.bf16.mxu0 %v470_v0  ;;  %v475_v5 = vld [vmem:[%s645_s1 + $0xc8] sm:$0xff]   ;;  %v479_v9 = vld [vmem:[%s645_s1 + $0xd0] sm:$0xff]  }
   0x3   :  { %v472_v2 = vld [vmem:[%s645_s1] sm:$0xff]   ;;  %448 = vmatprep.subr.bf16.mxu1 %v471_v1  ;;  %v476_v6 = vld [vmem:[%s645_s1 + $0x8] sm:$0xff]   ;;  %v480_v10 = vld [vmem:[%s645_s1 + $0x10] sm:$0xff]  }
   0x4   :  { %v473_v3 = vld [vmem:[%s645_s1 + $0x80] sm:$0xff]   ;;  %427 = vmatpush3.bf16.msra.mxu0 %v472_v2  ;;  %v477_v7 = vld [vmem:[%s645_s1 + $0x88] sm:$0xff]   ;;  %v481_v11 = vld [vmem:[%s645_s1 + $0x90] sm:$0xff]  }
   0x5   :  { %449 = vmatpush3.bf16.msra.mxu1 %v473_v3  ;;  %428 = vmatprep.subr.bf16.mxu0 %v474_v4  ;;  %v482_v12 = vld [vmem:[%s645_s1 + $0x58] sm:$0xff]   ;;  %v486_v16 = vld [vmem:[%s645_s1 + $0x60] sm:$0xff]   ;;  %v490_v20 = vld [vmem:[%s645_s1 + $0x68] sm:$0xff]  }
   0x6   :  { %450 = vmatprep.subr.bf16.mxu1 %v475_v5  ;;  %v483_v13 = vld [vmem:[%s645_s1 + $0xd8] sm:$0xff]   ;;  %v487_v17 = vld [vmem:[%s645_s1 + $0xe0] sm:$0xff]   ;;  %v491_v21 = vld [vmem:[%s645_s1 + $0xe8] sm:$0xff]  }
   0x7   :  { %v484_v14 = vld [vmem:[%s645_s1 + $0x18] sm:$0xff]   ;;  %v488_v18 = vld [vmem:[%s645_s1 + $0x20] sm:$0xff]   ;;  %v492_v22 = vld [vmem:[%s645_s1 + $0x28] sm:$0xff]  }
   0x8   :  { %429 = vmatpush3.bf16.msra.mxu0 %v476_v6  ;;  %v485_v15 = vld [vmem:[%s645_s1 + $0x98] sm:$0xff]   ;;  %v489_v19 = vld [vmem:[%s645_s1 + $0xa0] sm:$0xff]   ;;  %v493_v23 = vld [vmem:[%s645_s1 + $0xa8] sm:$0xff]  }
   0x9   :  { %451 = vmatpush3.bf16.msra.mxu1 %v477_v7  ;;  %430 = vmatprep.subr.bf16.mxu0 %v478_v8  ;;  %v494_v24 = vld [vmem:[%s645_s1 + $0x70] sm:$0xff]   ;;  %v498_v28 = vld [vmem:[%s645_s1 + $0x78] sm:$0xff]  }
   0xa   :  { %452 = vmatprep.subr.bf16.mxu1 %v479_v9  ;;  %v495_v25 = vld [vmem:[%s645_s1 + $0xf0] sm:$0xff]   ;;  %v499_v29 = vld [vmem:[%s645_s1 + $0xf8] sm:$0xff]  }
   0xb   :  { %v496_v26 = vld [vmem:[%s645_s1 + $0x30] sm:$0xff]   ;;  %v500_v30 = vld [vmem:[%s645_s1 + $0x38] sm:$0xff]  }
   0xc   :  { %431 = vmatpush3.bf16.msra.mxu0 %v480_v10  ;;  %v497_v27 = vld [vmem:[%s645_s1 + $0xb0] sm:$0xff]   ;;  %v501_v31 = vld [vmem:[%s645_s1 + $0xb8] sm:$0xff]  }
   0xd   :  { %453 = vmatpush3.bf16.msra.mxu1 %v481_v11  ;;  %432 = vmatprep.subr.bf16.mxu0 %v482_v12  ;;  %v502_v32 = vld [vmem:[%s646_s0] ss:$16 sps:$4 sm:$0xff]   ;;  %v504_v33 = vld [vmem:[%s646_s0 + $0x4] ss:$16 sps:$4 sm:$0xff]   ;;  %v505_v34 = vld [vmem:[%s646_s0 + $0x8] ss:$16 sps:$4 sm:$0xff]  }
   0xe   :  { %454 = vmatprep.subr.bf16.mxu1 %v483_v13  ;;  %v507_v35 = vld [vmem:[%s646_s0 + $0xc] ss:$16 sps:$4 sm:$0xff]   ;;  %324 = vmatprep.mubr.bf16.mxu0 %v504_v33 }
   0xf   :  { %365 = vmatprep.mubr.bf16.mxu1 %v507_v35 }
  0x10   :  { %433 = vmatpush3.bf16.msra.mxu0 %v484_v14 }
  0x11   :  { %455 = vmatpush3.bf16.msra.mxu1 %v485_v15  ;;  %434 = vmatprep.subr.bf16.mxu0 %v486_v16 }
  0x12   :  { %456 = vmatprep.subr.bf16.mxu1 %v487_v17 }
  0x14   :  { %435 = vmatpush3.bf16.msra.mxu0 %v488_v18 }
  0x15   :  { %457 = vmatpush3.bf16.msra.mxu1 %v489_v19  ;;  %436 = vmatprep.subr.bf16.mxu0 %v490_v20 }
  0x16   :  { %458 = vmatprep.subr.bf16.mxu1 %v491_v21 }
  0x18   :  { %437 = vmatpush3.bf16.msra.mxu0 %v492_v22 }
  0x19   :  { %459 = vmatpush3.bf16.msra.mxu1 %v493_v23  ;;  %438 = vmatprep.subr.bf16.mxu0 %v494_v24 }
  0x1a   :  { %460 = vmatprep.subr.bf16.mxu1 %v495_v25 }
  0x1c   :  { %439 = vmatpush3.bf16.msra.mxu0 %v496_v26 }
  0x1d   :  { %461 = vmatpush3.bf16.msra.mxu1 %v497_v27  ;;  %440 = vmatprep.subr.bf16.mxu0 %v498_v28 }
  0x1e   :  { %462 = vmatprep.subr.bf16.mxu1 %v499_v29 }
  0x20   :  { %441 = vmatpush3.bf16.msra.mxu0 %v500_v30 }
  0x21   :  { %463 = vmatpush3.bf16.msra.mxu1 %v501_v31 }
  0x23   :  { %325 = vmatmul.mubr.bf16.vlgmr.msra.gmra.mrb[0].mxu0 %v502_v32 }
  0x24   :  { %366 = vmatmul.mubr.bf16.vlgmr.msra.gmra.mrb[0].mxu1 %v505_v34 }
  0xf6   :  { %v442_v36 = vpop.f32.mrb[0].mxu0 }
  0xf7   :  { %v464_v37 = vpop.f32.mrb[0].mxu1  ;;  %v443_v38 = vpop.f32.mrb[1].mxu0 }
  0xf8   :  { %v444_v39 = vadd.f32 %v443_v38, %v442_v36  ;;  %v465_v40 = vpop.f32.mrb[1].mxu1  ;;  %v445_v41 = vpop.f32.mrb[2].mxu0 }
  0xf9   :  { %v466_v42 = vadd.f32 %v465_v40, %v464_v37  ;;  %v467_v43 = vpop.f32.mrb[2].mxu1  ;;  %v446_v44 = vpop.f32.mrb[3].mxu0 }
  0xfa   :  { %v447_v45 = vadd.f32 %v446_v44, %v445_v41  ;;  %v468_v46 = vpop.f32.mrb[3].mxu1 }
  0xfb   :  { %v368_v47 = vadd.f32 %v466_v42, %v444_v39  ;;  %v469_v48 = vadd.f32 %v468_v46, %v467_v43 }
  0xfd   :  { %v374_v49 = vsub.f32 0.0, %v368_v47  ;;  %v371_v50 = vadd.f32 %v469_v48, %v447_v45 }
  0xff   :  { %v376_v51 = vmul.f32 1.442695, %v374_v49  ;;  %v375_v52 = vsub.f32 0.0, %v371_v50 }
 0x101   :  { %508 = vpow2.f32 %v376_v51  ;;  %v378_v53 = vmul.f32 1.442695, %v375_v52 }
 0x103   :  { %510 = vpow2.f32 %v378_v53 }
 0x10b   :  { %v509_v54 = vpop.eup %508 }
 0x10c   :  { %v380_v55 = vadd.f32 1.0, %v509_v54 }
 0x10d   :  { %v511_v56 = vpop.eup %510 }
 0x10e   :  { %512 = vrcp.f32 %v380_v55  ;;  %v381_v57 = vadd.f32 1.0, %v511_v56 }
 0x110   :  { %514 = vrcp.f32 %v381_v57 }
 0x118   :  { %v513_v58 = vpop.eup %512 }
 0x119   :  { %384 = vst [vmem:[%s647_s2] sm:$0xff] %v513_v58 }
 0x11a   :  { %v515_v59 = vpop.eup %514 }
 0x11b   :  { %385 = vst [vmem:[%s647_s2 + $0x8] sm:$0xff] %v515_v59 }

</bundles_post_ra>
